<compile_context>
chip_gen: v7x
topology: tpu7x:2x2x1
jax: 0.10.0
libtpu: 0.0.40
codegen_flags: <defaults>
</compile_context>

<pallas_src>
import functools
import math

import numpy as np
import jax
import jax.numpy as jnp
from jax.experimental import pallas as pl
from jax.experimental.pallas import tpu as pltpu

_SQRT2_INV = 1.0 / math.sqrt(2.0)
# pywt.Wavelet('db1').rec_lo / rec_hi  (deterministic, requires_grad=False)
G0 = np.array([_SQRT2_INV, _SQRT2_INV], dtype=np.float32)    # rec_lo
G1 = np.array([_SQRT2_INV, -_SQRT2_INV], dtype=np.float32)   # rec_hi

_MIB = 1024 * 1024


# ---------------------------------------------------------------------------
# Hardware capability probe (trace-time, host-side).  Conservative fallbacks
# so the wrapper never fails even if the query is unavailable.
# ---------------------------------------------------------------------------
def _tpu_caps():
    vmem = 64 * _MIB     # v7x is the most constrained generation
    cores = 1            # v5e / v6e have a single TensorCore
    try:
        info = pltpu.get_tpu_info()
        for name in ("vmem_capacity_bytes", "vmem_size_bytes", "vmem_bytes"):
            v = getattr(info, name, None)
            if v:
                vmem = int(v)
                break
        for name in ("num_tensorcores", "tensorcore_count", "num_cores",
                     "core_count"):
            v = getattr(info, name, None)
            if v:
                cores = int(v)
                break
    except Exception:
        pass
    return vmem, cores


def _pick_block_batch(B, per_b_bytes, budget_bytes, num_cores):
    """Largest divisor of B whose double-buffered VMEM footprint fits the
    budget.  Only on multi-TensorCore chips do we additionally prefer a block
    count that divides evenly across the cores."""
    cap = max(1, budget_bytes // per_b_bytes)
    divisors = [d for d in range(1, B + 1) if B % d == 0 and d <= cap]
    if not divisors:
        return 1
    if num_cores >= 2:
        balanced = [d for d in divisors if (B // d) % num_cores == 0]
        if balanced:
            return max(balanced)
    return max(divisors)


# ---------------------------------------------------------------------------
# Roll helper: XLU rotate when the layout is aligned, slice+concat otherwise.
# Shift is always static here.
# ---------------------------------------------------------------------------
def _roll(x, shift, axis):
    axis = axis % x.ndim
    size = x.shape[axis]
    shift = shift % size
    if shift == 0:
        return x
    # pltpu.roll (vrot in the vector-extended slot) only for layout-aligned
    # blocks; unaligned small planes (e.g. W=16 tests) take the jnp.roll
    # slice+concat path, which Mosaic handles for any size.
    if x.shape[-1] % 128 == 0 and x.shape[-2] % 8 == 0:
        return pltpu.roll(x, shift, axis)
    return jnp.roll(x, shift, axis=axis)


# ---------------------------------------------------------------------------
# Fused multi-level kernel factory.
# level_plan: list (in processing order) of (shift, h_input_index or None).
# Kernel args: (a_ref, h_ref_0, ..., h_ref_{K-1}, o_ref)
#   a_ref: (bc, H, W) running lowpass reconstruction
#   h_ref: (bc, 3, H, W) stacked (lh, hl, hh) planes for one level
# ---------------------------------------------------------------------------
def _make_fused_kernel(level_plan):
    def kernel(*refs):
        a_ref = refs[0]
        o_ref = refs[-1]
        h_refs = refs[1:-1]

        # Accumulate in f32 regardless of the stored dtype.
        x = a_ref[...].astype(jnp.float32)

        for shift, h_idx in level_plan:
            if h_idx is None:
                # Highpass is None => lh = hl = hh = 0 => u00=u01=u10=u11=x.
                v0 = x + _roll(x, shift, -2)
                x = 0.125 * (v0 + _roll(v0, shift, -1))
            else:
                h = h_refs[h_idx]
                b = h[:, 0].astype(jnp.float32)   # lh
                c = h[:, 1].astype(jnp.float32)   # hl
                d = h[:, 2].astype(jnp.float32)   # hh

                # Haar butterfly; the (1/sqrt2)^2 row/col gains and the outer
                # /4 of the reference fold into the single 0.125 scale.
                t0 = x + b
                t1 = x - b
                t2 = c + d
                t3 = c - d
                u00 = t0 + t2
                u01 = t0 - t2
                u10 = t1 + t3
                u11 = t1 - t3

                # Re-associated: 2 sublane (H) rolls + 1 lane (W) roll.
                v0 = u00 + _roll(u10, shift, -2)
                v1 = u01 + _roll(u11, shift, -2)
                x = 0.125 * (v0 + _roll(v1, shift, -1))

        o_ref[...] = x.astype(o_ref.dtype)

    return kernel


# ---------------------------------------------------------------------------
# Wrapper: SWTInverse.forward for wave='db1', mode='periodic', separable=True.
# yl: (N, C, H, W); yh: list of (N, C, 3, H, W) or None (finest level last).
# ---------------------------------------------------------------------------
def swt_inverse_pallas(yl, yh):
    N, C, H, W = yl.shape
    B = N * C
    L = len(yh)
    if L == 0:
        return yl
    if H % (1 << L) != 0 or W % (1 << L) != 0:
        raise ValueError(
            f"SWTInverse (Haar, periodic) requires H and W divisible by "
            f"2**num_levels = {1 << L}; got H={H}, W={W}.")

    a = yl.reshape(B, H, W)

    # Processing order is coarsest -> finest (j = 0..L-1 uses yh[L-1-j]).
    h_arrays = []
    level_plan = []
    for j in range(L):
        shift = 1 << (L - j - 1)
        h = yh[L - 1 - j]
        if h is None:
            level_plan.append((shift, None))
        else:
            level_plan.append((shift, len(h_arrays)))
            h_arrays.append(h.reshape(B, 3, H, W))
    K = len(h_arrays)

    # Generation-aware block sizing.
    itemsize = jnp.dtype(a.dtype).itemsize
    plane_bytes = H * W * itemsize
    per_b = 2 * (3 * K + 2) * plane_bytes       # double-buffered planes/elem
    physical_vmem, num_cores = _tpu_caps()
    budget = min(max(physical_vmem // 2, 16 * _MIB), 56 * _MIB)
    bc = _pick_block_batch(B, per_b, budget, num_cores)
    vmem_limit = int(min(budget + 8 * _MIB, physical_vmem - 16 * _MIB))
    vmem_limit = max(vmem_limit, 32 * _MIB)

    a_spec = pl.BlockSpec((bc, H, W), lambda i: (i, 0, 0))
    h_spec = pl.BlockSpec((bc, 3, H, W), lambda i: (i, 0, 0, 0))

    elems = B * H * W
    cost = pl.CostEstimate(
        flops=int(12 * L * elems),
        transcendentals=0,
        bytes_accessed=int((2 + 3 * K) * elems * itemsize))

    # TODO(synk): for best lane utilisation W should be a multiple of 128;
    # small W (like the 16x16 test) runs correctly but under-fills vregs.
    out = pl.pallas_call(
        _make_fused_kernel(level_plan),
        grid=(B // bc,),
        in_specs=[a_spec] + [h_spec] * K,
        out_specs=a_spec,
        out_shape=jax.ShapeDtypeStruct((B, H, W), a.dtype),
        input_output_aliases={0: 0},
        compiler_params=pltpu.CompilerParams(
            dimension_semantics=("parallel",),
            vmem_limit_bytes=vmem_limit),
        cost_estimate=cost,
    )(a, *h_arrays)

    return out.reshape(N, C, H, W)


# ---------------------------------------------------------------------------
# Pure-JAX reference, following the PyTorch code literally (general
# periodic-mode transposed-conv formula with explicit loops).
# ---------------------------------------------------------------------------
def _sfb1d_ref(lo, hi, g0, g1, dim):
    d = dim % 4
    L = g0.shape[0]
    pp = L // 2
    p = 2 * pp - 1 + L // 2
    if d == 2:
        lop = jnp.concatenate([lo[:, :, -pp:, :], lo, lo[:, :, :pp, :]], axis=2)
        hip = jnp.concatenate([hi[:, :, -pp:, :], hi, hi[:, :, :pp, :]], axis=2)
    else:
        lop = jnp.concatenate([lo[..., -pp:], lo, lo[..., :pp]], axis=3)
        hip = jnp.concatenate([hi[..., -pp:], hi, hi[..., :pp]], axis=3)
    Lin = lop.shape[d]
    Nout = 2 * lo.shape[d]
    cols = []
    for o in range(Nout):
        acc = jnp.zeros_like(lo[:, :, 0, :] if d == 2 else lo[:, :, :, 0])
        for i in range(Lin):
            k = o + p - 2 * i
            if 0 <= k < L:
                if d == 2:
                    acc = acc + lop[:, :, i, :] * g0[k] + hip[:, :, i, :] * g1[k]
                else:
                    acc = acc + lop[:, :, :, i] * g0[k] + hip[:, :, :, i] * g1[k]
        cols.append(acc)
    return jnp.stack(cols, axis=d)


def _sfb2d_ref(ll, lh, hl, hh, g0c, g1c, g0r, g1r):
    lo = _sfb1d_ref(ll, lh, g0c, g1c, dim=2)
    hi = _sfb1d_ref(hl, hh, g0c, g1c, dim=2)
    return _sfb1d_ref(lo, hi, g0r, g1r, dim=3)


def swt_inverse_ref(yl, yh, g0c, g1c, g0r, g1r):
    out = yl
    num_levels = len(yh)
    H, W = yl.shape[2], yl.shape[3]
    for j in range(num_levels):
        step = 2 ** (num_levels - j - 1)
        h = yh[num_levels - 1 - j]
        lh, hl, hh = h[:, :, 0], h[:, :, 1], h[:, :, 2]
        for fh in range(step):
            for fw in range(step):
                eh = slice(fh, H, 2 * step); ew = slice(fw, W, 2 * step)
                oh = slice(fh + step, H, 2 * step); ow = slice(fw + step, W, 2 * step)
                ih = slice(fh, H, step); iw = slice(fw, W, step)
                x1 = _sfb2d_ref(out[..., eh, ew], lh[..., eh, ew],
                                hl[..., eh, ew], hh[..., eh, ew], g0c, g1c, g0r, g1r)
                x2 = _sfb2d_ref(out[..., eh, ow], lh[..., eh, ow],
                                hl[..., eh, ow], hh[..., eh, ow], g0c, g1c, g0r, g1r)
                x3 = _sfb2d_ref(out[..., oh, ew], lh[..., oh, ew],
                                hl[..., oh, ew], hh[..., oh, ew], g0c, g1c, g0r, g1r)
                x4 = _sfb2d_ref(out[..., oh, ow], lh[..., oh, ow],
                                hl[..., oh, ow], hh[..., oh, ow], g0c, g1c, g0r, g1r)
                x2 = jnp.roll(x2, 1, axis=3)
                x3 = jnp.roll(x3, 1, axis=2)
                x4 = jnp.roll(jnp.roll(x4, 1, axis=2), 1, axis=3)
                out = out.at[..., ih, iw].set((x1 + x2 + x3 + x4) / 4)
    return out


if __name__ == "__main__":
    key = jax.random.PRNGKey(0)
    N, C, H, W = 2, 4, 16, 16
    num_levels = 2

    k1, k2, k3 = jax.random.split(key, 3)
    yl = jax.random.normal(k1, (N, C, H, W), dtype=jnp.float32)
    yh = [jax.random.normal(k2, (N, C, 3, H, W), dtype=jnp.float32),
          jax.random.normal(k3, (N, C, 3, H, W), dtype=jnp.float32)]

    # --- dense highpass, two levels (fused single pallas_call) ---
    out = jax.block_until_ready(jax.jit(swt_inverse_pallas)(yl, yh))
    ref = jax.block_until_ready(swt_inverse_ref(yl, yh, G0, G1, G0, G1))
    np.testing.assert_allclose(np.asarray(out), np.asarray(ref),
                               rtol=1e-4, atol=1e-4)

    # --- None highpass (lowpass-only level, no zeros tensor in HBM) ---
    yh_none = [None]
    out2 = jax.block_until_ready(jax.jit(swt_inverse_pallas)(yl, yh_none))
    zeros = jnp.zeros((N, C, 3, H, W), dtype=jnp.float32)
    ref2 = jax.block_until_ready(swt_inverse_ref(yl, [zeros], G0, G1, G0, G1))
    np.testing.assert_allclose(np.asarray(out2), np.asarray(ref2),
                               rtol=1e-4, atol=1e-4)

    print("KERNEL_OK")
</pallas_src>

<mosaic_0001>
module attributes {stable_mosaic.version = 11 : i64} {
  func.func @kernel(%arg0: i32, %arg1: memref<8x16x16xf32, #tpu.memory_space<vmem>>, %arg2: memref<8x3x16x16xf32, #tpu.memory_space<vmem>>, %arg3: memref<8x3x16x16xf32, #tpu.memory_space<vmem>>, %arg4: memref<8x16x16xf32, #tpu.memory_space<vmem>>) attributes {dimension_semantics = [#tpu.dimension_semantics<parallel>], iteration_bounds = array<i64: 1>, scalar_prefetch = 0 : i64, scratch_operands = 0 : i64, tpu.core_type = #tpu.core_type<tc>, window_params = [{transform_indices = @transform_0, window_bounds = array<i64: 8, 16, 16>}, {transform_indices = @transform_1, window_bounds = array<i64: 8, 3, 16, 16>}, {transform_indices = @transform_2, window_bounds = array<i64: 8, 3, 16, 16>}, {transform_indices = @transform_3, window_bounds = array<i64: 8, 16, 16>}]} {
    %c0 = arith.constant 0 : index
    %c0_0 = arith.constant 0 : index
    %c0_1 = arith.constant 0 : index
    %0 = vector.load %arg1[%c0, %c0_0, %c0_1] : memref<8x16x16xf32, #tpu.memory_space<vmem>>, vector<8x16x16xf32>
    %c0_2 = arith.constant 0 : index
    %c0_3 = arith.constant 0 : index
    %c0_4 = arith.constant 0 : index
    %c0_5 = arith.constant 0 : index
    %1 = vector.load %arg2[%c0_2, %c0_3, %c0_4, %c0_5] : memref<8x3x16x16xf32, #tpu.memory_space<vmem>>, vector<8x1x16x16xf32>
    %2 = vector.shape_cast %1 : vector<8x1x16x16xf32> to vector<8x16x16xf32>
    %c0_6 = arith.constant 0 : index
    %c1 = arith.constant 1 : index
    %c0_7 = arith.constant 0 : index
    %c0_8 = arith.constant 0 : index
    %3 = vector.load %arg2[%c0_6, %c1, %c0_7, %c0_8] : memref<8x3x16x16xf32, #tpu.memory_space<vmem>>, vector<8x1x16x16xf32>
    %4 = vector.shape_cast %3 : vector<8x1x16x16xf32> to vector<8x16x16xf32>
    %c0_9 = arith.constant 0 : index
    %c2 = arith.constant 2 : index
    %c0_10 = arith.constant 0 : index
    %c0_11 = arith.constant 0 : index
    %5 = vector.load %arg2[%c0_9, %c2, %c0_10, %c0_11] : memref<8x3x16x16xf32, #tpu.memory_space<vmem>>, vector<8x1x16x16xf32>
    %6 = vector.shape_cast %5 : vector<8x1x16x16xf32> to vector<8x16x16xf32>
    %7 = arith.addf %0, %2 : vector<8x16x16xf32>
    %8 = arith.subf %0, %2 : vector<8x16x16xf32>
    %9 = arith.addf %4, %6 : vector<8x16x16xf32>
    %10 = arith.subf %4, %6 : vector<8x16x16xf32>
    %11 = arith.addf %7, %9 : vector<8x16x16xf32>
    %12 = arith.subf %7, %9 : vector<8x16x16xf32>
    %13 = arith.addf %8, %10 : vector<8x16x16xf32>
    %14 = arith.subf %8, %10 : vector<8x16x16xf32>
    %15 = vector.extract_strided_slice %13 {offsets = [0, 14, 0], sizes = [8, 2, 16], strides = [1, 1, 1]} : vector<8x16x16xf32> to vector<8x2x16xf32>
    %16 = vector.extract_strided_slice %13 {offsets = [0, 0, 0], sizes = [8, 14, 16], strides = [1, 1, 1]} : vector<8x16x16xf32> to vector<8x14x16xf32>
    %17 = tpu.concatenate %15, %16 in 1 : vector<8x2x16xf32>, vector<8x14x16xf32> -> vector<8x16x16xf32>
    %18 = arith.addf %11, %17 : vector<8x16x16xf32>
    %19 = vector.extract_strided_slice %14 {offsets = [0, 14, 0], sizes = [8, 2, 16], strides = [1, 1, 1]} : vector<8x16x16xf32> to vector<8x2x16xf32>
    %20 = vector.extract_strided_slice %14 {offsets = [0, 0, 0], sizes = [8, 14, 16], strides = [1, 1, 1]} : vector<8x16x16xf32> to vector<8x14x16xf32>
    %21 = tpu.concatenate %19, %20 in 1 : vector<8x2x16xf32>, vector<8x14x16xf32> -> vector<8x16x16xf32>
    %22 = arith.addf %12, %21 : vector<8x16x16xf32>
    %23 = vector.extract_strided_slice %22 {offsets = [0, 0, 14], sizes = [8, 16, 2], strides = [1, 1, 1]} : vector<8x16x16xf32> to vector<8x16x2xf32>
    %24 = vector.extract_strided_slice %22 {offsets = [0, 0, 0], sizes = [8, 16, 14], strides = [1, 1, 1]} : vector<8x16x16xf32> to vector<8x16x14xf32>
    %25 = tpu.concatenate %23, %24 in 2 : vector<8x16x2xf32>, vector<8x16x14xf32> -> vector<8x16x16xf32>
    %26 = arith.addf %18, %25 : vector<8x16x16xf32>
    %cst = arith.constant 1.250000e-01 : f32
    %27 = vector.broadcast %cst : f32 to vector<8x16x16xf32>
    %28 = arith.mulf %27, %26 : vector<8x16x16xf32>
    %c0_12 = arith.constant 0 : index
    %c0_13 = arith.constant 0 : index
    %c0_14 = arith.constant 0 : index
    %c0_15 = arith.constant 0 : index
    %29 = vector.load %arg3[%c0_12, %c0_13, %c0_14, %c0_15] : memref<8x3x16x16xf32, #tpu.memory_space<vmem>>, vector<8x1x16x16xf32>
    %30 = vector.shape_cast %29 : vector<8x1x16x16xf32> to vector<8x16x16xf32>
    %c0_16 = arith.constant 0 : index
    %c1_17 = arith.constant 1 : index
    %c0_18 = arith.constant 0 : index
    %c0_19 = arith.constant 0 : index
    %31 = vector.load %arg3[%c0_16, %c1_17, %c0_18, %c0_19] : memref<8x3x16x16xf32, #tpu.memory_space<vmem>>, vector<8x1x16x16xf32>
    %32 = vector.shape_cast %31 : vector<8x1x16x16xf32> to vector<8x16x16xf32>
    %c0_20 = arith.constant 0 : index
    %c2_21 = arith.constant 2 : index
    %c0_22 = arith.constant 0 : index
    %c0_23 = arith.constant 0 : index
    %33 = vector.load %arg3[%c0_20, %c2_21, %c0_22, %c0_23] : memref<8x3x16x16xf32, #tpu.memory_space<vmem>>, vector<8x1x16x16xf32>
    %34 = vector.shape_cast %33 : vector<8x1x16x16xf32> to vector<8x16x16xf32>
    %35 = arith.addf %28, %30 : vector<8x16x16xf32>
    %36 = arith.subf %28, %30 : vector<8x16x16xf32>
    %37 = arith.addf %32, %34 : vector<8x16x16xf32>
    %38 = arith.subf %32, %34 : vector<8x16x16xf32>
    %39 = arith.addf %35, %37 : vector<8x16x16xf32>
    %40 = arith.subf %35, %37 : vector<8x16x16xf32>
    %41 = arith.addf %36, %38 : vector<8x16x16xf32>
    %42 = arith.subf %36, %38 : vector<8x16x16xf32>
    %43 = vector.extract_strided_slice %41 {offsets = [0, 15, 0], sizes = [8, 1, 16], strides = [1, 1, 1]} : vector<8x16x16xf32> to vector<8x1x16xf32>
    %44 = vector.extract_strided_slice %41 {offsets = [0, 0, 0], sizes = [8, 15, 16], strides = [1, 1, 1]} : vector<8x16x16xf32> to vector<8x15x16xf32>
    %45 = tpu.concatenate %43, %44 in 1 : vector<8x1x16xf32>, vector<8x15x16xf32> -> vector<8x16x16xf32>
    %46 = arith.addf %39, %45 : vector<8x16x16xf32>
    %47 = vector.extract_strided_slice %42 {offsets = [0, 15, 0], sizes = [8, 1, 16], strides = [1, 1, 1]} : vector<8x16x16xf32> to vector<8x1x16xf32>
    %48 = vector.extract_strided_slice %42 {offsets = [0, 0, 0], sizes = [8, 15, 16], strides = [1, 1, 1]} : vector<8x16x16xf32> to vector<8x15x16xf32>
    %49 = tpu.concatenate %47, %48 in 1 : vector<8x1x16xf32>, vector<8x15x16xf32> -> vector<8x16x16xf32>
    %50 = arith.addf %40, %49 : vector<8x16x16xf32>
    %51 = vector.extract_strided_slice %50 {offsets = [0, 0, 15], sizes = [8, 16, 1], strides = [1, 1, 1]} : vector<8x16x16xf32> to vector<8x16x1xf32>
    %52 = vector.extract_strided_slice %50 {offsets = [0, 0, 0], sizes = [8, 16, 15], strides = [1, 1, 1]} : vector<8x16x16xf32> to vector<8x16x15xf32>
    %53 = tpu.concatenate %51, %52 in 2 : vector<8x16x1xf32>, vector<8x16x15xf32> -> vector<8x16x16xf32>
    %54 = arith.addf %46, %53 : vector<8x16x16xf32>
    %cst_24 = arith.constant 1.250000e-01 : f32
    %55 = vector.broadcast %cst_24 : f32 to vector<8x16x16xf32>
    %56 = arith.mulf %55, %54 : vector<8x16x16xf32>
    %c0_25 = arith.constant 0 : index
    %c0_26 = arith.constant 0 : index
    %c0_27 = arith.constant 0 : index
    %57 = vector.load %arg4[%c0_25, %c0_26, %c0_27] : memref<8x16x16xf32, #tpu.memory_space<vmem>>, vector<8x16x16xf32>
    tpu.vector_store %arg4[%c0_25, %c0_26, %c0_27], %56 {strides = array<i32>} : memref<8x16x16xf32, #tpu.memory_space<vmem>>, vector<8x16x16xf32>,
    return
  }
  func.func @transform_0(%arg0: i32) -> (i32, i32, i32) {
    %c0_i32 = arith.constant 0 : i32
    %c0_i32_0 = arith.constant 0 : i32
    %c0_i32_1 = arith.constant 0 : i32
    return %arg0, %c0_i32, %c0_i32_0 : i32, i32, i32
  }
  func.func @transform_1(%arg0: i32) -> (i32, i32, i32, i32) {
    %c0_i32 = arith.constant 0 : i32
    %c0_i32_0 = arith.constant 0 : i32
    %c0_i32_1 = arith.constant 0 : i32
    %c0_i32_2 = arith.constant 0 : i32
    return %arg0, %c0_i32, %c0_i32_0, %c0_i32_1 : i32, i32, i32, i32
  }
  func.func @transform_2(%arg0: i32) -> (i32, i32, i32, i32) {
    %c0_i32 = arith.constant 0 : i32
    %c0_i32_0 = arith.constant 0 : i32
    %c0_i32_1 = arith.constant 0 : i32
    %c0_i32_2 = arith.constant 0 : i32
    return %arg0, %c0_i32, %c0_i32_0, %c0_i32_1 : i32, i32, i32, i32
  }
  func.func @transform_3(%arg0: i32) -> (i32, i32, i32) {
    %c0_i32 = arith.constant 0 : i32
    %c0_i32_0 = arith.constant 0 : i32
    %c0_i32_1 = arith.constant 0 : i32
    return %arg0, %c0_i32, %c0_i32_0 : i32, i32, i32
  }
}

</mosaic_0001>

<bundles_post_ra>
// kernel: swt_inverse_pallas.1
= control target key start
LH: loop header
LB: loop body
LE: loop exit
PB: predicated region body
PF: predicated region fallthrough
CT: control target
= control target key end

     0   :  { %8 = vsyncpa [#allocation3], 0  ;;  %s2308_s0 = inlined_call_operand.vmem [shape: f32[8,16,16], index: 0, kind: input, shape index: {}, may-alias: {0,3}]   ;;  %s2309_s1 = inlined_call_operand.hbm [shape: f32[8,3,16,16], index: 1, kind: input, shape index: {}]   ;;  %s2310_s2 = inlined_call_operand.hbm [shape: f32[8,3,16,16], index: 2, kind: input, shape index: {}]   ;;  %s2311_s3 = inlined_call_operand.vmem [shape: f32[8,16,16], index: 3, kind: output, shape index: {}, may-alias: {0,3}]  }
   0x1   :  { %9 = vsyncpa [#allocation5], 0  ;;  %s1169_s12 = smov [#allocation2]   ;;  %s1121_s16 = scalar_lea.hbm %s2309_s1, 6144 }
   0x2   :  { %s17_s13 = sshll.u32 %s1169_s12, 4  ;;  %p1122_p0 = scmp.ne.s32.totalorder %s2309_s1, %s1121_s16  ;;  %s18_s13 = int_to_ptr.vmem [resolvable:$true] %s17_s13 }
   0x3   :  { %p1125_p1 = scmp.lt.u32.totalorder %s1121_s16, %s2309_s1 }
   0x5   :  { %p1127_p2 = pnand %p1125_p1, %p1122_p0 }
   0x7   :  { %1130 = shalt.err (!%p1127_p2)
}
   0x8   :  { %s1131_s21 = scalar_lea.vmem %s18_s13, 6144  ;;  %p1136_p4 = scmp.lt.s32.totalorder %s18_s13, %s18_s13 }
   0x9   :  { %p1132_p3 = scmp.ne.s32.totalorder %s18_s13, %s1131_s21  ;;  %p1137_p5 = scmp.lt.s32.totalorder %s1131_s21, %s1131_s21 }
   0xb   :  { %p1138_p6 = por %p1137_p5, %p1136_p4 }
   0xd   :  { %p1139_p7 = pnand %p1138_p6, %p1132_p3 }
   0xf   :  { %1142 = shalt.err (!%p1139_p7)
}
  0x10   :  { %s1170_s22 = smov 128   ;;  %s1171_s23 = smov 8  }
  0x11   :  { %23 = dma.hbm_to_vmem [thread:$0]  %s2309_s1, 6144, %s18_s13, [#allocation3], %s1170_s22, %s1170_s22, %s1171_s23  }
  0x12   :  { %s1172_s26 = smov [#allocation4]   ;;  %s1143_s30 = scalar_lea.hbm %s2310_s2, 6144 }
  0x13   :  { %s29_s27 = sshll.u32 %s1172_s26, 4  ;;  %p1144_p8 = scmp.ne.s32.totalorder %s2310_s2, %s1143_s30  ;;  %s30_s27 = int_to_ptr.vmem [resolvable:$true] %s29_s27 }
  0x14   :  { %p1147_p9 = scmp.lt.u32.totalorder %s1143_s30, %s2310_s2 }
  0x16   :  { %p1149_p10 = pnand %p1147_p9, %p1144_p8 }
  0x18   :  { %1152 = shalt.err (!%p1149_p10)
}
  0x19   :  { %s1153_s8 = scalar_lea.vmem %s30_s27, 6144  ;;  %p1158_p12 = scmp.lt.s32.totalorder %s30_s27, %s30_s27 }
  0x1a   :  { %p1154_p11 = scmp.ne.s32.totalorder %s30_s27, %s1153_s8  ;;  %p1159_p13 = scmp.lt.s32.totalorder %s1153_s8, %s1153_s8 }
  0x1c   :  { %p1160_p0 = por %p1159_p13, %p1158_p12 }
  0x1e   :  { %p1161_p1 = pnand %p1160_p0, %p1154_p11 }
  0x20   :  { %1164 = shalt.err (!%p1161_p1)
}
  0x21   :  { %35 = dma.hbm_to_vmem [thread:$0]  %s2310_s2, 6144, %s30_s27, [#allocation5], %s1170_s22, %s1170_s22, %s1171_s23  }
  0x22   :  { %1165 = dma.done.wait [#allocation3], 6144  }
  0x23   :  { %1166 = vsyncadd [#allocation3], 4294961152 }
  0x24   :  { %1167 = dma.done.wait [#allocation5], 6144  }
  0x25   :  { %1168 = vsyncadd [#allocation5], 4294961152  ;;  %v44_v0 = vld [vmem:[%s2308_s0 + $0x10] sm:$0xff]  ;;  %v45_v1 = vld [vmem:[%s2308_s0 + $0x18] sm:$0xff]  ;;  %vm268_vm0 = vcmask 1041408   ;;  %s1173_s25 = smov 114  }
  0x26   :  { %v60_v2 = vld [vmem:[#allocation2 + $0x30] sm:$0xff]  ;;  %v61_v3 = vld [vmem:[#allocation2 + $0x38] sm:$0xff]  ;;  %v77_v4 = vld [vmem:[#allocation2 + $0x40] sm:$0xff]  ;;  %vm525_vm1 = vcmask 15360   ;;  %vm784_vm2 = vcmask 1040384   ;;  %s1175_s2 = smov 113  }
  0x27   :  { %v78_v5 = vld [vmem:[#allocation2 + $0x48] sm:$0xff]  ;;  %v126_v6 = vsub.f32 %v44_v0, %v60_v2  ;;  %v94_v7 = vld [vmem:[#allocation2 + $0x50] sm:$0xff]  ;;  %v95_v8 = vld [vmem:[#allocation2 + $0x58] sm:$0xff]  ;;  %v1227_v9 = vadd.f32 %v60_v2, %v44_v0  ;;  %v1229_v10 = vsub.f32 %v45_v1, %v61_v3  ;;  %v1234_v12 = vadd.f32 %v61_v3, %v45_v1  ;;  %s1176_s14 = smov 1  }
  0x28   :  { %v42_v11 = vld [vmem:[%s2308_s0] sm:$0xff]  ;;  %v1236_v13 = vadd.f32 %v94_v7, %v77_v4  ;;  %v158_v14 = vsub.f32 %v77_v4, %v94_v7  ;;  %v1238_v15 = vsub.f32 %v78_v5, %v95_v8  ;;  %v43_v16 = vld [vmem:[%s2308_s0 + $0x8] sm:$0xff]  ;;  %v1243_v19 = vadd.f32 %v95_v8, %v78_v5  ;;  %v75_v20 = vld [vmem:[#allocation2 + $0x10] sm:$0xff] }
  0x29   :  { %v58_v17 = vld [vmem:[#allocation2] sm:$0xff]  ;;  %v59_v18 = vld [vmem:[#allocation2 + $0x8] sm:$0xff]  ;;  %v76_v21 = vld [vmem:[#allocation2 + $0x18] sm:$0xff]  ;;  %vm1041_vm3 = vcmask 7168   ;;  %vm1090_vm4 = vcmask 130048  }
  0x2a   :  { %v92_v22 = vld [vmem:[#allocation2 + $0x20] sm:$0xff]  ;;  %v1245_v23 = vadd.f32 %v58_v17, %v42_v11  ;;  %v124_v24 = vsub.f32 %v42_v11, %v58_v17  ;;  %v1247_v25 = vsub.f32 %v43_v16, %v59_v18  ;;  %v1249_v26 = vadd.f32 %v158_v14, %v126_v6  ;;  %v93_v29 = vld [vmem:[#allocation2 + $0x28] sm:$0xff]  ;;  %v79_v47 = vld [vmem:[#allocation2 + $0x70] sm:$0xff] }
  0x2b   :  { %v222_v27 = vsub.f32 %v126_v6, %v158_v14  ;;  %v223_v28 = vsub.f32 %v1229_v10, %v1238_v15  ;;  %v1253_v30 = vadd.f32 %v59_v18, %v43_v16  ;;  %v190_v31 = vsub.f32 %v1227_v9, %v1236_v13  ;;  %v46_v39 = vld [vmem:[%s2308_s0 + $0x20] sm:$0xff]  ;;  %v47_v40 = vld [vmem:[%s2308_s0 + $0x28] sm:$0xff]  ;;  %v80_v51 = vld [vmem:[#allocation2 + $0x78] sm:$0xff] }
  0x2c   :  { %v1257_v32 = vadd.f32 %v92_v22, %v75_v20  ;;  %v156_v33 = vsub.f32 %v75_v20, %v92_v22  ;;  %v1259_v34 = vsub.f32 %v76_v21, %v93_v29  ;;  %v191_v37 = vsub.f32 %v1234_v12, %v1243_v19  ;;  %v62_v45 = vld [vmem:[#allocation2 + $0x60] sm:$0xff]  ;;  %v63_v46 = vld [vmem:[#allocation2 + $0x68] sm:$0xff]  ;;  %v48_v63 = vld [vmem:[%s2308_s0 + $0x30] sm:$0xff] }
  0x2d   :  { %v334_v35 = vrot.slane %v223_v28, 6  ;;  %v359_v36 = vrot.slane %v222_v27, 6  ;;  %v1263_v38 = vadd.f32 %v93_v29, %v76_v21  ;;  %v96_v52 = vld [vmem:[#allocation2 + $0x80] sm:$0xff]  ;;  %v97_v53 = vld [vmem:[#allocation2 + $0x88] sm:$0xff]  ;;  %v1281_v54 = vadd.f32 %v63_v46, %v47_v40  ;;  %v49_v0 = vld [vmem:[%s2308_s0 + $0x38] sm:$0xff] }
  0x2e   :  { %v188_v41 = vsub.f32 %v1245_v23, %v1257_v32  ;;  %v1273_v42 = vadd.f32 %v156_v33, %v124_v24  ;;  %v220_v43 = vsub.f32 %v124_v24, %v156_v33  ;;  %v221_v44 = vsub.f32 %v1247_v25, %v1259_v34  ;;  %v64_v1 = vld [vmem:[#allocation2 + $0x90] sm:$0xff]  ;;  %v65_v6 = vld [vmem:[#allocation2 + $0x98] sm:$0xff]  ;;  %v81_v7 = vld [vmem:[#allocation2 + $0xa0] sm:$0xff] }
  0x2f   :  { %v390_v48 = vsel %vm268_vm0, %v334_v35, %v359_v36  ;;  %v360_v49 = vsel %vm268_vm0, %v359_v36, %v334_v35  ;;  %v189_v50 = vsub.f32 %v1253_v30, %v1263_v38  ;;  %v1288_v60 = vsub.f32 %v46_v39, %v62_v45  ;;  %v98_v8 = vld [vmem:[#allocation2 + $0xb0] sm:$0xff]  ;;  %v82_v18 = vld [vmem:[#allocation2 + $0xa8] sm:$0xff]  ;;  %v99_v20 = vld [vmem:[#allocation2 + $0xb8] sm:$0xff] }
  0x30   :  { %v1283_v55 = vadd.f32 %v390_v48, %v190_v31  ;;  %v333_v57 = vrot.slane %v221_v44, 6  ;;  %v357_v58 = vrot.slane %v220_v43, 6  ;;  %v1286_v59 = vadd.f32 %v360_v49, %v191_v37  ;;  %v67_v48 = vld [vmem:[#allocation2 + $0xc8] sm:$0xff]  ;;  %v83_v49 = vld [vmem:[#allocation2 + $0xd0] sm:$0xff] }
  0x31   :  { %v1290_v61 = vsub.f32 %v47_v40, %v63_v46  ;;  %v1292_v62 = vadd.f32 %v97_v53, %v80_v51  ;;  %v1304_v4 = vsub.f32 %v79_v47, %v96_v52  ;;  %v1306_v5 = vsub.f32 %v80_v51, %v97_v53  ;;  %v50_v40 = vld [vmem:[%s2308_s0 + $0x40] sm:$0xff]  ;;  %v84_v53 = vld [vmem:[#allocation2 + $0xd8] sm:$0xff]  ;;  %v102_v56 = vld [vmem:[#allocation2 + $0x110] sm:$0xff] }
  0x32   :  { %2364 = vst [vmem:[#allocation8_spill] sm:$0xff] %v1283_v55  ;;  %433 = vrot.lane.b32.xlu1 %v1283_v55, %s1173_s25  ;;  %v389_v2 = vsel %vm268_vm0, %v333_v57, %v357_v58  ;;  %v358_v3 = vsel %vm268_vm0, %v357_v58, %v333_v57  ;;  %v1314_v17 = vadd.f32 %v62_v45, %v46_v39  ;;  %v100_v57 = vld [vmem:[#allocation2 + $0xe0] sm:$0xff]  ;;  %v101_v58 = vld [vmem:[#allocation2 + $0xe8] sm:$0xff] }
  0x33   :  { %v1308_v11 = vadd.f32 %v389_v2, %v188_v41  ;;  %v1310_v14 = vadd.f32 %v358_v3, %v189_v50  ;;  %v193_v16 = vsub.f32 %v1281_v54, %v1292_v62  ;;  %v224_v21 = vsub.f32 %v1288_v60, %v1304_v4  ;;  %v51_v41 = vld [vmem:[%s2308_s0 + $0x48] sm:$0xff] }
  0x34   :  { %v225_v22 = vsub.f32 %v1290_v61, %v1306_v5  ;;  %v1320_v24 = vadd.f32 %v96_v52, %v79_v47  ;;  %v1322_v27 = vadd.f32 %v65_v6, %v49_v0  ;;  %v1326_v28 = vsub.f32 %v48_v63, %v64_v1  ;;  %v66_v47 = vld [vmem:[#allocation2 + $0xc0] sm:$0xff] }
  0x35   :  { %429 = vrot.lane.b32.xlu0 %v1308_v11, %s1173_s25  ;;  %v1328_v29 = vsub.f32 %v49_v0, %v65_v6  ;;  %v1330_v31 = vadd.f32 %v99_v20, %v82_v18  ;;  %v1332_v33 = vsub.f32 %v81_v7, %v98_v8  ;;  %v361_v36 = vrot.slane %v224_v21, 6 }
  0x36   :  { %435 = vrot.lane.b32.xlu1 %v1286_v59, %s1173_s25  ;;  %v335_v35 = vrot.slane %v225_v22, 6  ;;  %v192_v37 = vsub.f32 %v1314_v17, %v1320_v24  ;;  %v1338_v39 = vsub.f32 %v82_v18, %v99_v20  ;;  %v1350_v45 = vadd.f32 %v64_v1, %v48_v63  ;;  %v52_v20 = vld [vmem:[%s2308_s0 + $0x50] sm:$0xff] }
  0x37   :  { %v195_v43 = vsub.f32 %v1322_v27, %v1330_v31  ;;  %v226_v44 = vsub.f32 %v1326_v28, %v1332_v33  ;;  %v1352_v46 = vadd.f32 %v98_v8, %v81_v7  ;;  %v1358_v0 = vadd.f32 %v67_v48, %v51_v41 }
  0x38   :  { %v362_v50 = vsel %vm268_vm0, %v361_v36, %v335_v35  ;;  %v391_v51 = vsel %vm268_vm0, %v335_v35, %v361_v36  ;;  %v227_v52 = vsub.f32 %v1328_v29, %v1338_v39  ;;  %v1368_v7 = vsub.f32 %v50_v40, %v66_v47 }
  0x39   :  { %2365 = vst [vmem:[#allocation9_spill] sm:$0xff] %v1358_v0  ;;  %431 = vrot.lane.b32.xlu0 %v1310_v14, %s1173_s25  ;;  %v1362_v63 = vadd.f32 %v362_v50, %v193_v16  ;;  %v1364_v1 = vadd.f32 %v391_v51, %v192_v37  ;;  %v363_v2 = vrot.slane %v226_v44, 6  ;;  %v194_v3 = vsub.f32 %v1350_v45, %v1352_v46  ;;  %v53_v16 = vld [vmem:[%s2308_s0 + $0x58] sm:$0xff]  ;;  %v68_v37 = vld [vmem:[#allocation2 + $0xf0] sm:$0xff]  ;;  %v85_v44 = vld [vmem:[#allocation2 + $0x100] sm:$0xff] }
  0x3a   :  { %v336_v6 = vrot.slane %v227_v52, 6  ;;  %v1370_v8 = vsub.f32 %v51_v41, %v67_v48  ;;  %v1372_v18 = vadd.f32 %v101_v58, %v84_v53  ;;  %v1382_v21 = vsub.f32 %v83_v49, %v100_v57  ;;  %v69_v41 = vld [vmem:[#allocation2 + $0xf8] sm:$0xff]  ;;  %v86_v52 = vld [vmem:[#allocation2 + $0x108] sm:$0xff] }
  0x3b   :  { %2366 = vst [vmem:[#allocation10_spill] sm:$0xff] %v1362_v63  ;;  %2367 = vst [vmem:[#allocation11_spill] sm:$0xff] %v1364_v1  ;;  %439 = vrot.lane.b32.xlu1 %v1362_v63, %s1173_s25  ;;  %v1384_v22 = vsub.f32 %v84_v53, %v101_v58  ;;  %v1386_v35 = vadd.f32 %v66_v47, %v50_v40  ;;  %v1388_v36 = vadd.f32 %v100_v57, %v83_v49  ;;  %v103_v63 = vld [vmem:[#allocation2 + $0x118] sm:$0xff] }
  0x3c   :  { %2368 = vst [vmem:[#allocation12_spill] sm:$0xff] %v1370_v8  ;;  %2369 = vst [vmem:[#allocation13_spill] sm:$0xff] %v1372_v18  ;;  %v364_v48 = vsel %vm268_vm0, %v363_v2, %v336_v6  ;;  %v392_v50 = vsel %vm268_vm0, %v336_v6, %v363_v2  ;;  %v197_v51 = vsub.f32 %v1358_v0, %v1372_v18 }
  0x3d   :  { %2370 = vst [vmem:[#allocation14_spill] sm:$0xff] %v1384_v22  ;;  %2371 = vst [vmem:[#allocation15_spill] sm:$0xff] %v1386_v35  ;;  %v1394_v55 = vadd.f32 %v69_v41, %v53_v16  ;;  %437 = vrot.lane.b32.xlu0 %v1364_v1, %s1173_s25  ;;  %v1398_v40 = vadd.f32 %v364_v48, %v195_v43  ;;  %v1400_v47 = vadd.f32 %v392_v50, %v194_v3  ;;  %v54_v43 = vld [vmem:[%s2308_s0 + $0x60] sm:$0xff] }
  0x3e   :  { %2372 = vst [vmem:[#allocation16_spill] sm:$0xff] %v1388_v36  ;;  %v228_v49 = vsub.f32 %v1368_v7, %v1382_v21  ;;  %v229_v53 = vsub.f32 %v1370_v8, %v1384_v22  ;;  %v196_v57 = vsub.f32 %v1386_v35, %v1388_v36  ;;  %v1408_v58 = vsub.f32 %v52_v20, %v68_v37  ;;  %v71_v36 = vld [vmem:[#allocation2 + $0x128] sm:$0xff] }
  0x3f   :  { %2373 = vst [vmem:[#allocation17_spill] sm:$0xff] %v1394_v55  ;;  %2374 = vst [vmem:[#allocation18_spill] sm:$0xff] %v1398_v40  ;;  %v1410_v2 = vsub.f32 %v53_v16, %v69_v41  ;;  %v1412_v6 = vadd.f32 %v103_v63, %v86_v52  ;;  %443 = vrot.lane.b32.xlu1 %v1398_v40, %s1173_s25  ;;  %v1419_v50 = vsub.f32 %v85_v44, %v102_v56  ;;  %v55_v16 = vld [vmem:[%s2308_s0 + $0x68] sm:$0xff]  ;;  %v70_v41 = vld [vmem:[#allocation2 + $0x120] sm:$0xff] }
  0x40   :  { %2375 = vst [vmem:[#allocation19_spill] sm:$0xff] %v1400_v47  ;;  %v337_v3 = vrot.slane %v229_v53, 6  ;;  %v365_v48 = vrot.slane %v228_v49, 6  ;;  %v1421_v18 = vsub.f32 %v86_v52, %v103_v63  ;;  %v1428_v0 = vadd.f32 %v68_v37, %v52_v20  ;;  %v87_v40 = vld [vmem:[#allocation2 + $0x130] sm:$0xff]  ;;  %v88_v20 = vld [vmem:[#allocation2 + $0x138] sm:$0xff]  ;;  %v104_v37 = vld [vmem:[#allocation2 + $0x140] sm:$0xff] }
  0x41   :  { %2376 = vst [vmem:[#allocation20_spill] sm:$0xff] %v1410_v2  ;;  %2377 = vst [vmem:[#allocation21_spill] sm:$0xff] %v1412_v6  ;;  %v199_v35 = vsub.f32 %v1394_v55, %v1412_v6  ;;  %v1430_v1 = vadd.f32 %v102_v56, %v85_v44  ;;  %v1432_v53 = vadd.f32 %v71_v36, %v55_v16  ;;  %441 = vrot.lane.b32.xlu0 %v1400_v47, %s1173_s25  ;;  %v105_v56 = vld [vmem:[#allocation2 + $0x148] sm:$0xff] }
  0x42   :  { %2378 = vst [vmem:[#allocation22_spill] sm:$0xff] %v1419_v50  ;;  %2379 = vst [vmem:[#allocation23_spill] sm:$0xff] %v1421_v18  ;;  %v366_v63 = vsel %vm268_vm0, %v365_v48, %v337_v3  ;;  %v393_v52 = vsel %vm268_vm0, %v337_v3, %v365_v48  ;;  %v230_v49 = vsub.f32 %v1408_v58, %v1419_v50 }
  0x43   :  { %2380 = vst [vmem:[#allocation24_spill] sm:$0xff] %v1428_v0  ;;  %2381 = vst [vmem:[#allocation25_spill] sm:$0xff] %v1430_v1  ;;  %v231_v6 = vsub.f32 %v1410_v2, %v1421_v18  ;;  %v1442_v44 = vadd.f32 %v366_v63, %v197_v51  ;;  %v1444_v55 = vadd.f32 %v393_v52, %v196_v57  ;;  %v56_v18 = vld [vmem:[%s2308_s0 + $0x70] sm:$0xff]  ;;  %v57_v51 = vld [vmem:[%s2308_s0 + $0x78] sm:$0xff]  ;;  %s1174_s0 = smov 2  }
  0x44   :  { %2382 = vst [vmem:[#allocation26_spill] sm:$0xff] %v1432_v53  ;;  %v198_v47 = vsub.f32 %v1428_v0, %v1430_v1  ;;  %v1448_v22 = vsub.f32 %v54_v43, %v70_v41  ;;  %v367_v3 = vrot.slane %v230_v49, 6  ;;  %v1450_v48 = vsub.f32 %v55_v16, %v71_v36  ;;  %v72_v16 = vld [vmem:[#allocation2 + $0x150] sm:$0xff]  ;;  %v73_v52 = vld [vmem:[#allocation2 + $0x158] sm:$0xff]  ;;  %v89_v49 = vld [vmem:[#allocation2 + $0x160] sm:$0xff] }
  0x45   :  { %2383 = vst [vmem:[#allocation27_spill] sm:$0xff] %v1442_v44  ;;  %2384 = vst [vmem:[#allocation28_spill] sm:$0xff] %v1444_v55  ;;  %v338_v8 = vrot.slane %v231_v6, 6  ;;  %v1452_v50 = vadd.f32 %v105_v56, %v88_v20  ;;  %447 = vrot.lane.b32.xlu1 %v1442_v44, %s1173_s25  ;;  %v1462_v57 = vsub.f32 %v87_v40, %v104_v37  ;;  %445 = vrot.lane.b32.xlu0 %v1444_v55, %s1173_s25  ;;  %v90_v2 = vld [vmem:[#allocation2 + $0x168] sm:$0xff] }
  0x46   :  { %v1464_v63 = vsub.f32 %v88_v20, %v105_v56  ;;  %v1466_v6 = vadd.f32 %v70_v41, %v54_v43  ;;  %v1468_v36 = vadd.f32 %v104_v37, %v87_v40  ;;  %v106_v20 = vld [vmem:[#allocation2 + $0x170] sm:$0xff]  ;;  %v107_v56 = vld [vmem:[#allocation2 + $0x178] sm:$0xff]  ;;  %v1476_v43 = vadd.f32 %v73_v52, %v57_v51 }
  0x47   :  { %2385 = vst [vmem:[#allocation29_spill] sm:$0xff] %v1452_v50  ;;  %v368_v1 = vsel %vm268_vm0, %v367_v3, %v338_v8  ;;  %v394_v0 = vsel %vm268_vm0, %v338_v8, %v367_v3  ;;  %v201_v44 = vsub.f32 %v1432_v53, %v1452_v50  ;;  %v232_v37 = vsub.f32 %v1448_v22, %v1462_v57 }
  0x48   :  { %2386 = vst [vmem:[#allocation30_spill] sm:$0xff] %v1464_v63  ;;  %2387 = vst [vmem:[#allocation31_spill] sm:$0xff] %v1466_v6  ;;  %v1478_v40 = vadd.f32 %v368_v1, %v199_v35  ;;  %v1480_v41 = vadd.f32 %v394_v0, %v198_v47  ;;  %v233_v55 = vsub.f32 %v1450_v48, %v1464_v63 }
  0x49   :  { %2388 = vst [vmem:[#allocation32_spill] sm:$0xff] %v1468_v36  ;;  %v200_v8 = vsub.f32 %v1466_v6, %v1468_v36  ;;  %v1488_v3 = vsub.f32 %v56_v18, %v72_v16  ;;  %v1490_v50 = vsub.f32 %v57_v51, %v73_v52  ;;  %v1492_v53 = vadd.f32 %v107_v56, %v90_v2 }
  0x4a   :  { %451 = vrot.lane.b32.xlu1 %v1478_v40, %s1173_s25  ;;  %v339_v0 = vrot.slane %v233_v55, 6  ;;  %v369_v1 = vrot.slane %v232_v37, 6  ;;  %v1496_v35 = vsub.f32 %v89_v49, %v106_v20  ;;  %v1498_v47 = vsub.f32 %v90_v2, %v107_v56  ;;  %449 = vrot.lane.b32.xlu0 %v1480_v41, %s1173_s25 }
  0x4b   :  { %2389 = vst [vmem:[#allocation33_spill] sm:$0xff] %v1492_v53  ;;  %v203_v36 = vsub.f32 %v1476_v43, %v1492_v53  ;;  %v1504_v6 = vadd.f32 %v72_v16, %v56_v18  ;;  %v1506_v51 = vadd.f32 %v106_v20, %v89_v49  ;;  %v173_v52 = vadd.f32 %v1263_v38, %v1253_v30 }
  0x4c   :  { %v370_v55 = vsel %vm268_vm0, %v369_v1, %v339_v0  ;;  %v395_v37 = vsel %vm268_vm0, %v339_v0, %v369_v1  ;;  %v234_v2 = vsub.f32 %v1488_v3, %v1496_v35  ;;  %v235_v56 = vsub.f32 %v1490_v50, %v1498_v47 }
  0x4d   :  { %v1516_v63 = vadd.f32 %v370_v55, %v201_v44  ;;  %v1518_v53 = vadd.f32 %v395_v37, %v200_v8  ;;  %v202_v18 = vsub.f32 %v1504_v6, %v1506_v51  ;;  %v205_v30 = vadd.f32 %v1259_v34, %v1247_v25 }
  0x4e   :  { %v340_v38 = vrot.slane %v235_v56, 6  ;;  %v371_v16 = vrot.slane %v234_v2, 6  ;;  %v271_v49 = vrot.slane %v1249_v26, 6  ;;  %v172_v20 = vadd.f32 %v1257_v32, %v1245_v23 }
  0x4f   :  { %455 = vrot.lane.b32.xlu1 %v1516_v63, %s1173_s25  ;;  %453 = vrot.lane.b32.xlu0 %v1518_v53, %s1173_s25  ;;  %v244_v44 = vrot.slane %v205_v30, 6  ;;  %v175_v8 = vadd.f32 %v1243_v19, %v1234_v12  ;;  %v207_v26 = vadd.f32 %v1238_v15, %v1229_v10  ;;  %v174_v34 = vadd.f32 %v1236_v13, %v1227_v9 }
  0x50   :  { %v372_v0 = vsel %vm268_vm0, %v371_v16, %v340_v38  ;;  %v396_v25 = vsel %vm268_vm0, %v340_v38, %v371_v16  ;;  %v2390_v37 = vrot.slane %v1273_v42, 6  ;;  %v177_v9 = vadd.f32 %v1292_v62, %v1281_v54  ;;  %v2394_v38 = vld [vmem:[#allocation14_spill] sm:$0xff] }
  0x51   :  { %v1539_v1 = vadd.f32 %v372_v0, %v203_v36  ;;  %v1541_v55 = vadd.f32 %v396_v25, %v202_v18  ;;  %v245_v10 = vrot.slane %v207_v26, 6  ;;  %v208_v13 = vadd.f32 %v1304_v4, %v1288_v60  ;;  %v2398_v0 = vld [vmem:[#allocation13_spill] sm:$0xff]  ;;  %v2399_v26 = vld [vmem:[#allocation15_spill] sm:$0xff] }
  0x52   :  { %v270_v23 = vsel %vm268_vm0, %v2390_v37, %v244_v44  ;;  %v2391_v12 = vmov %v2390_v37  ;;  %v209_v15 = vadd.f32 %v1306_v5, %v1290_v61  ;;  %v179_v30 = vadd.f32 %v1330_v31, %v1322_v27  ;;  %v2392_v31 = vld [vmem:[#allocation8_spill] sm:$0xff] }
  0x53   :  { %v301_v19 = vsel %vm268_vm0, %v244_v44, %v2391_v12  ;;  %v1549_v32 = vadd.f32 %v270_v23, %v173_v52  ;;  %459 = vrot.lane.b32.xlu1 %v1539_v1, %s1173_s25  ;;  %457 = vrot.lane.b32.xlu0 %v1541_v55, %s1173_s25  ;;  %v272_v42 = vsel %vm268_vm0, %v271_v49, %v245_v10  ;;  %v273_v18 = vrot.slane %v208_v13, 6 }
  0x54   :  { %v1551_v2 = vadd.f32 %v301_v19, %v172_v20  ;;  %v302_v36 = vsel %vm268_vm0, %v245_v10, %v271_v49  ;;  %v176_v52 = vadd.f32 %v1320_v24, %v1314_v17  ;;  %v1567_v54 = vadd.f32 %v272_v42, %v175_v8  ;;  %v2395_v49 = vld [vmem:[#allocation10_spill] sm:$0xff]  ;;  %v2397_v8 = vld [vmem:[#allocation9_spill] sm:$0xff]  ;;  %v2402_v10 = vld [vmem:[#allocation19_spill] sm:$0xff] }
  0x55   :  { %v1569_v62 = vadd.f32 %v302_v36, %v174_v34  ;;  %v246_v56 = vrot.slane %v209_v15, 6  ;;  %v210_v60 = vadd.f32 %v1332_v33, %v1326_v28  ;;  %v211_v61 = vadd.f32 %v1338_v39, %v1328_v29  ;;  %v2400_v34 = vld [vmem:[#allocation16_spill] sm:$0xff]  ;;  %v2401_v19 = vld [vmem:[#allocation18_spill] sm:$0xff]  ;;  %v2405_v42 = vld [vmem:[#allocation23_spill] sm:$0xff] }
  0x56   :  { %v178_v4 = vadd.f32 %v1352_v46, %v1350_v45  ;;  %v212_v45 = vadd.f32 %v1382_v21, %v1368_v7  ;;  %v2393_v46 = vld [vmem:[#allocation12_spill] sm:$0xff]  ;;  %v181_v25 = vadd.f32 %v2398_v0, %v2397_v8  ;;  %v180_v37 = vadd.f32 %v2400_v34, %v2399_v26 }
  0x57   :  { %479 = vrot.lane.b32.xlu1 %v1310_v14, %s1174_s0  ;;  %477 = vrot.lane.b32.xlu0 %v1308_v11, %s1174_s0  ;;  %v274_v5 = vsel %vm268_vm0, %v273_v18, %v246_v56  ;;  %v303_v17 = vsel %vm268_vm0, %v246_v56, %v273_v18  ;;  %v247_v28 = vrot.slane %v211_v61, 6  ;;  %v275_v29 = vrot.slane %v210_v60, 6  ;;  %v2404_v15 = vld [vmem:[#allocation20_spill] sm:$0xff]  ;;  %v2406_v18 = vld [vmem:[#allocation27_spill] sm:$0xff]  ;;  %v2408_v60 = vld [vmem:[#allocation17_spill] sm:$0xff] }
  0x58   :  { %v1585_v24 = vadd.f32 %v274_v5, %v177_v9  ;;  %v1587_v27 = vadd.f32 %v303_v17, %v176_v52  ;;  %v213_v16 = vadd.f32 %v2394_v38, %v2393_v46  ;;  %v277_v20 = vrot.slane %v212_v45, 6  ;;  %v2403_v9 = vld [vmem:[#allocation22_spill] sm:$0xff]  ;;  %v2409_v61 = vld [vmem:[#allocation21_spill] sm:$0xff]  ;;  %v2410_v5 = vld [vmem:[#allocation24_spill] sm:$0xff] }
  0x59   :  { %v276_v14 = vsel %vm268_vm0, %v275_v29, %v247_v28  ;;  %v304_v11 = vsel %vm268_vm0, %v247_v28, %v275_v29  ;;  %v214_v13 = vadd.f32 %v2403_v9, %v1408_v58  ;;  %v215_v36 = vadd.f32 %v2405_v42, %v2404_v15  ;;  %v2411_v17 = vld [vmem:[#allocation25_spill] sm:$0xff]  ;;  %v2414_v45 = vld [vmem:[#allocation30_spill] sm:$0xff]  ;;  %v2418_v8 = vld [vmem:[#allocation32_spill] sm:$0xff] }
  0x5a   :  { %v1595_v33 = vadd.f32 %v276_v14, %v179_v30  ;;  %v1597_v39 = vadd.f32 %v304_v11, %v178_v4  ;;  %v248_v44 = vrot.slane %v213_v16, 6  ;;  %v2407_v30 = vld [vmem:[#allocation28_spill] sm:$0xff]  ;;  %v183_v4 = vadd.f32 %v2409_v61, %v2408_v60  ;;  %v594_v60 = vld [vmem:[#allocation4 + $0x48] sm:$0xff]  ;;  %v611_v61 = vld [vmem:[#allocation4 + $0x58] sm:$0xff] }
  0x5b   :  { %483 = vrot.lane.b32.xlu1 %v1286_v59, %s1174_s0  ;;  %481 = vrot.lane.b32.xlu0 %v2392_v31, %s1174_s0  ;;  %v2396_v59 = vld [vmem:[#allocation11_spill] sm:$0xff]  ;;  %v249_v52 = vrot.slane %v215_v36, 6  ;;  %v279_v56 = vrot.slane %v214_v13, 6  ;;  %v182_v28 = vadd.f32 %v2411_v17, %v2410_v5  ;;  %v216_v11 = vadd.f32 %v1462_v57, %v1448_v22  ;;  %v610_v5 = vld [vmem:[#allocation4 + $0x50] sm:$0xff] }
  0x5c   :  { %v278_v23 = vsel %vm268_vm0, %v277_v20, %v248_v44  ;;  %v305_v7 = vsel %vm268_vm0, %v248_v44, %v277_v20  ;;  %v217_v46 = vadd.f32 %v2414_v45, %v1450_v48  ;;  %v2417_v20 = vld [vmem:[#allocation31_spill] sm:$0xff] }
  0x5d   :  { %v1613_v21 = vadd.f32 %v278_v23, %v181_v25  ;;  %v1615_v12 = vadd.f32 %v305_v7, %v180_v37  ;;  %v280_v29 = vsel %vm268_vm0, %v279_v56, %v249_v52  ;;  %v306_v58 = vsel %vm268_vm0, %v249_v52, %v279_v56  ;;  %v592_v52 = vld [vmem:[#allocation4 + $0x18] sm:$0xff]  ;;  %v609_v56 = vld [vmem:[#allocation4 + $0x28] sm:$0xff] }
  0x5e   :  { %v1635_v31 = vadd.f32 %v280_v29, %v183_v4  ;;  %v1637_v14 = vadd.f32 %v306_v58, %v182_v28  ;;  %v250_v38 = vrot.slane %v217_v46, 6  ;;  %v281_v16 = vrot.slane %v216_v11, 6  ;;  %v593_v4 = vld [vmem:[#allocation4 + $0x40] sm:$0xff]  ;;  %v596_v17 = vld [vmem:[#allocation4 + $0x78] sm:$0xff]  ;;  %v613_v28 = vld [vmem:[#allocation4 + $0x88] sm:$0xff] }
  0x5f   :  { %487 = vrot.lane.b32.xlu1 %v2395_v49, %s1174_s0  ;;  %485 = vrot.lane.b32.xlu0 %v2396_v59, %s1174_s0  ;;  %v2415_v49 = vld [vmem:[#allocation26_spill] sm:$0xff]  ;;  %v2416_v59 = vld [vmem:[#allocation29_spill] sm:$0xff]  ;;  %v184_v0 = vadd.f32 %v2418_v8, %v2417_v20  ;;  %v219_v25 = vadd.f32 %v1498_v47, %v1490_v50  ;;  %v186_v37 = vadd.f32 %v1506_v51, %v1504_v6  ;;  %v612_v58 = vld [vmem:[#allocation4 + $0x80] sm:$0xff] }
  0x60   :  { %2412 = vst [vmem:[#allocation8_spill] sm:$0xff] %v1635_v31  ;;  %2413 = vst [vmem:[#allocation12_spill] sm:$0xff] %v1637_v14  ;;  %v185_v44 = vadd.f32 %v2416_v59, %v2415_v49  ;;  %v307_v22 = vsel %vm268_vm0, %v250_v38, %v281_v16  ;;  %v595_v29 = vld [vmem:[#allocation4 + $0x70] sm:$0xff]  ;;  %v598_v11 = vld [vmem:[#allocation4 + $0xa8] sm:$0xff]  ;;  %v1713_v8 = vsub.f32 %v594_v60, %v611_v61 }
  0x61   :  { %v1659_v48 = vadd.f32 %v307_v22, %v184_v0  ;;  %v251_v34 = vrot.slane %v219_v25, 6  ;;  %v615_v45 = vld [vmem:[#allocation4 + $0xb8] sm:$0xff]  ;;  %v614_v49 = vld [vmem:[#allocation4 + $0xb0] sm:$0xff]  ;;  %v1715_v0 = vsub.f32 %v593_v4, %v610_v5  ;;  %v1717_v25 = vsub.f32 %v596_v17, %v613_v28  ;;  %v620_v31 = vld [vmem:[#allocation4 + $0x140] sm:$0xff] }
  0x62   :  { %v600_v59 = vld [vmem:[#allocation4 + $0xd8] sm:$0xff]  ;;  %v599_v22 = vld [vmem:[#allocation4 + $0xd0] sm:$0xff] }
  0x63   :  { %491 = vrot.lane.b32.xlu1 %v2401_v19, %s1174_s0  ;;  %489 = vrot.lane.b32.xlu0 %v2402_v10, %s1174_s0  ;;  %2420 = vst [vmem:[#allocation10_spill] sm:$0xff] %v1659_v48  ;;  %v604_v48 = vld [vmem:[#allocation4 + $0x138] sm:$0xff]  ;;  %v603_v14 = vld [vmem:[#allocation4 + $0x130] sm:$0xff] }
  0x67   :  { %495 = vrot.lane.b32.xlu1 %v2406_v18, %s1174_s0  ;;  %493 = vrot.lane.b32.xlu0 %v2407_v30, %s1174_s0  ;;  %v591_v18 = vld [vmem:[#allocation4 + $0x10] sm:$0xff]  ;;  %v608_v30 = vld [vmem:[#allocation4 + $0x20] sm:$0xff] }
  0x68   :  { %v1711_v20 = vsub.f32 %v591_v18, %v608_v30 }
  0x6b   :  { %499 = vrot.lane.b32.xlu1 %v1478_v40, %s1174_s0  ;;  %497 = vrot.lane.b32.xlu0 %v1480_v41, %s1174_s0  ;;  %v282_v40 = vsel %vm268_vm0, %v281_v16, %v250_v38  ;;  %v218_v41 = vadd.f32 %v1496_v35, %v1488_v3  ;;  %v597_v16 = vld [vmem:[#allocation4 + $0xa0] sm:$0xff] }
  0x6c   :  { %v1657_v57 = vadd.f32 %v282_v40, %v185_v44  ;;  %v1709_v44 = vsub.f32 %v592_v52, %v609_v56  ;;  %v617_v40 = vld [vmem:[#allocation4 + $0xe8] sm:$0xff] }
  0x6d   :  { %v283_v26 = vrot.slane %v218_v41, 6  ;;  %v616_v41 = vld [vmem:[#allocation4 + $0xe0] sm:$0xff] }
  0x6e   :  { %2419 = vst [vmem:[#allocation14_spill] sm:$0xff] %v1657_v57 }
  0x6f   :  { %503 = vrot.lane.b32.xlu1 %v1516_v63, %s1174_s0  ;;  %501 = vrot.lane.b32.xlu0 %v1518_v53, %s1174_s0  ;;  %v2421_v53 = vld [vmem:[#allocation33_spill] sm:$0xff]  ;;  %v284_v23 = vsel %vm268_vm0, %v283_v26, %v251_v34  ;;  %v308_v3 = vsel %vm268_vm0, %v251_v34, %v283_v26  ;;  %v1719_v26 = vsub.f32 %v595_v29, %v612_v58 }
  0x70   :  { %v187_v63 = vadd.f32 %v2421_v53, %v1476_v43  ;;  %v1677_v50 = vadd.f32 %v308_v3, %v186_v37  ;;  %v1721_v53 = vadd.f32 %v609_v56, %v592_v52  ;;  %v602_v34 = vld [vmem:[#allocation4 + $0x108] sm:$0xff]  ;;  %v619_v37 = vld [vmem:[#allocation4 + $0x118] sm:$0xff]  ;;  %v1727_v3 = vsub.f32 %v597_v16, %v614_v49 }
  0x71   :  { %v1735_v52 = vsub.f32 %v599_v22, %v616_v41  ;;  %v1737_v56 = vadd.f32 %v613_v28, %v596_v17 }
  0x72   :  { %v1675_v35 = vadd.f32 %v284_v23, %v187_v63  ;;  %2423 = vst [vmem:[#allocation9_spill] sm:$0xff] %v1677_v50  ;;  %v1723_v63 = vadd.f32 %v608_v30, %v591_v18  ;;  %v1725_v23 = vsub.f32 %v598_v11, %v615_v45  ;;  %v1729_v50 = vadd.f32 %v611_v61, %v594_v60  ;;  %v621_v30 = vld [vmem:[#allocation4 + $0x148] sm:$0xff] }
  0x73   :  { %507 = vrot.lane.b32.xlu1 %v1539_v1, %s1174_s0  ;;  %505 = vrot.lane.b32.xlu0 %v1541_v55, %s1174_s0  ;;  %2430 = vst [vmem:[#allocation20_spill] sm:$0xff] %v1735_v52  ;;  %v1739_v18 = vadd.f32 %v612_v58, %v595_v29  ;;  %v575_v52 = vld [vmem:[#allocation4 + $0x8] sm:$0xff]  ;;  %v1752_v58 = vadd.f32 %v614_v49, %v597_v16 }
  0x74   :  { %2422 = vst [vmem:[#allocation11_spill] sm:$0xff] %v1675_v35  ;;  %v1731_v35 = vadd.f32 %v610_v5, %v593_v4  ;;  %v1744_v4 = vsub.f32 %v602_v34, %v619_v37  ;;  %v1746_v5 = vadd.f32 %v615_v45, %v598_v11  ;;  %v1758_v11 = vadd.f32 %v617_v40, %v600_v59 }
  0x75   :  { %2431 = vst [vmem:[#allocation23_spill] sm:$0xff] %v1739_v18  ;;  %v1760_v45 = vadd.f32 %v616_v41, %v599_v22 }
  0x76   :  { %2432 = vst [vmem:[#allocation27_spill] sm:$0xff] %v1744_v4  ;;  %2433 = vst [vmem:[#allocation28_spill] sm:$0xff] %v1746_v5  ;;  %v622_v4 = vld [vmem:[#allocation4 + $0x170] sm:$0xff] }
  0x77   :  { %2435 = vst [vmem:[#allocation21_spill] sm:$0xff] %v1758_v11 }
  0xa4   :  { %v1679_v47 = vpop.permute.xlu1 %433 }
  0xa7   :  { %v1681_v1 = vpop.permute.xlu0 %429 }
  0xa8   :  { %v1683_v55 = vpop.permute.xlu1 %435 }
  0xab   :  { %v432_v7 = vpop.permute.xlu0 %431 }
  0xad   :  { %v1685_v43 = vpop.permute.xlu1 %439 }
  0xaf   :  { %v1687_v19 = vpop.permute.xlu0 %437 }
  0xb1   :  { %v1689_v6 = vpop.permute.xlu1 %443 }
  0xb3   :  { %v1691_v51 = vpop.permute.xlu0 %441 }
  0xb7   :  { %v1693_v10 = vpop.permute.xlu1 %447  ;;  %v1695_v9 = vpop.permute.xlu0 %445 }
  0xbc   :  { %v1697_v13 = vpop.permute.xlu1 %451  ;;  %v1699_v15 = vpop.permute.xlu0 %449 }
  0xbd   :  { %2424 = vst [vmem:[#allocation13_spill] sm:$0xff] %v1699_v15  ;;  %v623_v15 = vld [vmem:[#allocation4 + $0x178] sm:$0xff] }
  0xc1   :  { %v1701_v42 = vpop.permute.xlu1 %455  ;;  %v1703_v36 = vpop.permute.xlu0 %453 }
  0xc2   :  { %2425 = vst [vmem:[#allocation15_spill] sm:$0xff] %v1701_v42  ;;  %2426 = vst [vmem:[#allocation16_spill] sm:$0xff] %v1703_v36  ;;  %v1733_v42 = vsub.f32 %v600_v59, %v617_v40  ;;  %v1772_v59 = vadd.f32 %v621_v30, %v604_v48 }
  0xc4   :  { %2429 = vst [vmem:[#allocation22_spill] sm:$0xff] %v1733_v42  ;;  %v606_v42 = vld [vmem:[#allocation4 + $0x168] sm:$0xff] }
  0xc5   :  { %v1705_v46 = vpop.permute.xlu1 %459  ;;  %v1707_v38 = vpop.permute.xlu0 %457 }
  0xc6   :  { %2427 = vst [vmem:[#allocation18_spill] sm:$0xff] %v1705_v46  ;;  %2428 = vst [vmem:[#allocation19_spill] sm:$0xff] %v1707_v38  ;;  %v601_v38 = vld [vmem:[#allocation4 + $0x100] sm:$0xff]  ;;  %v618_v46 = vld [vmem:[#allocation4 + $0x110] sm:$0xff] }
  0xc7   :  { %v1750_v29 = vsub.f32 %v601_v38, %v618_v46 }
  0xc9   :  { %v480_v36 = vpop.permute.xlu1 %479  ;;  %v478_v57 = vpop.permute.xlu0 %477 }
  0xca   :  { %v527_v60 = vsel %vm525_vm1, %v432_v7, %v480_v36  ;;  %v526_v61 = vsel %vm525_vm1, %v1681_v1, %v478_v57  ;;  %v574_v7 = vld [vmem:[#allocation4] sm:$0xff]  ;;  %v1754_v36 = vsub.f32 %v604_v48, %v621_v30  ;;  %v1756_v57 = vsub.f32 %v603_v14, %v620_v31 }
  0xcb   :  { %v543_v17 = vadd.f32 %v527_v60, %v1549_v32  ;;  %v542_v28 = vadd.f32 %v526_v61, %v1551_v2  ;;  %v605_v1 = vld [vmem:[#allocation4 + $0x160] sm:$0xff]  ;;  %v1762_v2 = vsub.f32 %v606_v42, %v623_v15  ;;  %v1764_v61 = vadd.f32 %v619_v37, %v602_v34 }
  0xcc   :  { %2434 = vst [vmem:[#allocation17_spill] sm:$0xff] %v1756_v57  ;;  %v1770_v57 = vadd.f32 %v618_v46, %v601_v38  ;;  %v1774_v41 = vsub.f32 %v605_v1, %v622_v4  ;;  %v1780_v37 = vadd.f32 %v623_v15, %v606_v42 }
  0xcd   :  { %v559_v5 = vmul.f32 0.125, %v543_v17  ;;  %v558_v18 = vmul.f32 0.125, %v542_v28  ;;  %v484_v32 = vpop.permute.xlu1 %483  ;;  %v482_v60 = vpop.permute.xlu0 %481  ;;  %v1776_v17 = vadd.f32 %v620_v31, %v603_v14  ;;  %v577_v31 = vld [vmem:[#allocation4 + $0x38] sm:$0xff]  ;;  %v576_v14 = vld [vmem:[#allocation4 + $0x30] sm:$0xff] }
  0xce   :  { %v529_v16 = vsel %vm525_vm1, %v1683_v55, %v484_v32  ;;  %v528_v49 = vsel %vm525_vm1, %v1679_v47, %v482_v60  ;;  %v1782_v55 = vadd.f32 %v622_v4, %v605_v1 }
  0xcf   :  { %v641_v40 = vsub.f32 %v559_v5, %v575_v52  ;;  %v640_v22 = vsub.f32 %v558_v18, %v574_v7  ;;  %v545_v28 = vadd.f32 %v529_v16, %v1567_v54  ;;  %v544_v34 = vadd.f32 %v528_v49, %v1569_v62 }
  0xd0   :  { %v1796_v4 = vadd.f32 %v575_v52, %v559_v5  ;;  %v1798_v1 = vadd.f32 %v574_v7, %v558_v18 }
  0xd1   :  { %v1785_v47 = vadd.f32 %v1709_v44, %v641_v40  ;;  %v737_v48 = vsub.f32 %v641_v40, %v1709_v44  ;;  %v1789_v46 = vadd.f32 %v1711_v20, %v640_v22  ;;  %v736_v38 = vsub.f32 %v640_v22, %v1711_v20  ;;  %v488_v30 = vpop.permute.xlu1 %487  ;;  %v486_v54 = vpop.permute.xlu0 %485 }
  0xd2   :  { %v561_v32 = vmul.f32 0.125, %v545_v28  ;;  %v560_v62 = vmul.f32 0.125, %v544_v34  ;;  %v531_v15 = vsel %vm525_vm1, %v1685_v43, %v488_v30  ;;  %v530_v42 = vsel %vm525_vm1, %v1687_v19, %v486_v54 }
  0xd3   :  { %v849_v44 = vrot.slane %v737_v48, 7  ;;  %v873_v60 = vrot.slane %v736_v38, 7  ;;  %v547_v28 = vadd.f32 %v531_v15, %v1585_v24  ;;  %v546_v43 = vadd.f32 %v530_v42, %v1587_v27  ;;  %v579_v38 = vld [vmem:[#allocation4 + $0x68] sm:$0xff] }
  0xd4   :  { %v643_v49 = vsub.f32 %v561_v32, %v577_v31  ;;  %v642_v40 = vsub.f32 %v560_v62, %v576_v14  ;;  %v1802_v22 = vadd.f32 %v577_v31, %v561_v32  ;;  %v578_v31 = vld [vmem:[#allocation4 + $0x60] sm:$0xff]  ;;  %v1820_v42 = vadd.f32 %v576_v14, %v560_v62 }
  0xd5   :  { %v492_v34 = vpop.permute.xlu1 %491  ;;  %v490_v19 = vpop.permute.xlu0 %489  ;;  %v874_v52 = vsel %vm784_vm2, %v873_v60, %v849_v44  ;;  %v563_v30 = vmul.f32 0.125, %v547_v28  ;;  %v562_v24 = vmul.f32 0.125, %v546_v43 }
  0xd6   :  { %v1808_v18 = vadd.f32 %v1713_v8, %v643_v49  ;;  %v739_v5 = vsub.f32 %v643_v49, %v1713_v8  ;;  %v1812_v7 = vadd.f32 %v1715_v0, %v642_v40  ;;  %v738_v48 = vsub.f32 %v642_v40, %v1715_v0  ;;  %v580_v0 = vld [vmem:[#allocation4 + $0x90] sm:$0xff] }
  0xd7   :  { %v533_v27 = vsel %vm525_vm1, %v1689_v6, %v492_v34  ;;  %v532_v54 = vsel %vm525_vm1, %v1691_v51, %v490_v19  ;;  %v705_v8 = vsub.f32 %v1796_v4, %v1721_v53  ;;  %v645_v40 = vsub.f32 %v563_v30, %v579_v38 }
  0xd8   :  { %v850_v15 = vrot.slane %v739_v5, 7  ;;  %v875_v49 = vrot.slane %v738_v48, 7  ;;  %v644_v28 = vsub.f32 %v562_v24, %v578_v31  ;;  %v1825_v16 = vadd.f32 %v579_v38, %v563_v30  ;;  %v581_v48 = vld [vmem:[#allocation4 + $0x98] sm:$0xff] }
  0xd9   :  { %v496_v43 = vpop.permute.xlu1 %495  ;;  %v549_v6 = vadd.f32 %v533_v27, %v1595_v33  ;;  %v548_v51 = vadd.f32 %v532_v54, %v1597_v39  ;;  %v1829_v34 = vadd.f32 %v874_v52, %v705_v8  ;;  %v1832_v14 = vadd.f32 %v1717_v25, %v645_v40  ;;  %v494_v38 = vpop.permute.xlu0 %493 }
  0xda   :  { %v741_v62 = vsub.f32 %v645_v40, %v1717_v25  ;;  %v1836_v19 = vadd.f32 %v1719_v26, %v644_v28  ;;  %v740_v5 = vsub.f32 %v644_v28, %v1719_v26  ;;  %v905_v33 = vsel %vm784_vm2, %v849_v44, %v873_v60 }
  0xdb   :  { %2436 = vst [vmem:[#allocation24_spill] sm:$0xff] %v1829_v34  ;;  %v565_v30 = vmul.f32 0.125, %v549_v6  ;;  %v564_v32 = vmul.f32 0.125, %v548_v51  ;;  %947 = vrot.lane.b32.xlu1 %v1829_v34, %s1175_s2  ;;  %v535_v39 = vsel %vm525_vm1, %v1693_v10, %v496_v43  ;;  %v1845_v27 = vadd.f32 %v578_v31, %v562_v24  ;;  %v584_v34 = vld [vmem:[#allocation4 + $0xf0] sm:$0xff] }
  0xdc   :  { %v851_v52 = vrot.slane %v741_v62, 7  ;;  %v704_v26 = vsub.f32 %v1798_v1, %v1723_v63  ;;  %v877_v8 = vrot.slane %v740_v5, 7  ;;  %v551_v44 = vadd.f32 %v535_v39, %v1613_v21  ;;  %v583_v62 = vld [vmem:[#allocation4 + $0xc8] sm:$0xff] }
  0xdd   :  { %v647_v40 = vsub.f32 %v565_v30, %v581_v48  ;;  %v646_v28 = vsub.f32 %v564_v32, %v580_v0  ;;  %v1850_v6 = vadd.f32 %v581_v48, %v565_v30  ;;  %v534_v10 = vsel %vm525_vm1, %v1695_v9, %v494_v38  ;;  %v500_v5 = vpop.permute.xlu1 %499  ;;  %v498_v30 = vpop.permute.xlu0 %497 }
  0xde   :  { %v1852_v51 = vadd.f32 %v905_v33, %v704_v26  ;;  %v567_v48 = vmul.f32 0.125, %v551_v44  ;;  %v550_v21 = vadd.f32 %v534_v10, %v1615_v12  ;;  %v707_v9 = vsub.f32 %v1802_v22, %v1729_v50 }
  0xdf   :  { %v1858_v60 = vadd.f32 %v1725_v23, %v647_v40  ;;  %v743_v31 = vsub.f32 %v647_v40, %v1725_v23  ;;  %v1862_v24 = vadd.f32 %v1727_v3, %v646_v28  ;;  %v742_v43 = vsub.f32 %v646_v28, %v1727_v3  ;;  %v582_v3 = vld [vmem:[#allocation4 + $0xc0] sm:$0xff] }
  0xe0   :  { %2437 = vst [vmem:[#allocation25_spill] sm:$0xff] %v1852_v51  ;;  %945 = vrot.lane.b32.xlu0 %v1852_v51, %s1175_s2  ;;  %v876_v38 = vsel %vm784_vm2, %v875_v49, %v850_v15  ;;  %v1874_v39 = vadd.f32 %v580_v0, %v564_v32  ;;  %v706_v26 = vsub.f32 %v1820_v42, %v1731_v35  ;;  %v566_v12 = vmul.f32 0.125, %v550_v21  ;;  %v2442_v0 = vld [vmem:[#allocation22_spill] sm:$0xff] }
  0xe1   :  { %2438 = vst [vmem:[#allocation30_spill] sm:$0xff] %v1858_v60  ;;  %2439 = vst [vmem:[#allocation26_spill] sm:$0xff] %v1862_v24  ;;  %v1872_v33 = vrot.slane %v743_v31, 7  ;;  %v649_v28 = vsub.f32 %v567_v48, %v583_v62  ;;  %v1879_v44 = vadd.f32 %v876_v38, %v707_v9  ;;  %v879_v10 = vrot.slane %v742_v43, 7  ;;  %v2441_v31 = vld [vmem:[#allocation13_spill] sm:$0xff]  ;;  %v504_v38 = vpop.permute.xlu1 %503 }
  0xe2   :  { %v906_v54 = vsel %vm784_vm2, %v850_v15, %v875_v49  ;;  %v537_v23 = vsel %vm525_vm1, %v1697_v13, %v500_v5  ;;  %v536_v32 = vsel %vm525_vm1, %v2441_v31, %v498_v30  ;;  %v648_v51 = vsub.f32 %v566_v12, %v582_v3  ;;  %v2445_v15 = vld [vmem:[#allocation8_spill] sm:$0xff] }
  0xe3   :  { %2440 = vst [vmem:[#allocation29_spill] sm:$0xff] %v1879_v44  ;;  %v1887_v25 = vadd.f32 %v2442_v0, %v649_v28  ;;  %v745_v20 = vsub.f32 %v649_v28, %v2442_v0  ;;  %951 = vrot.lane.b32.xlu1 %v1879_v44, %s1175_s2  ;;  %v709_v43 = vsub.f32 %v1825_v16, %v1737_v56  ;;  %v2446_v13 = vld [vmem:[#allocation12_spill] sm:$0xff]  ;;  %v585_v44 = vld [vmem:[#allocation4 + $0xf8] sm:$0xff] }
  0xe4   :  { %v1894_v21 = vadd.f32 %v906_v54, %v706_v26  ;;  %v553_v49 = vadd.f32 %v537_v23, %v2445_v15  ;;  %v552_v5 = vadd.f32 %v536_v32, %v2446_v13  ;;  %v878_v9 = vsel %vm784_vm2, %v877_v8, %v851_v52  ;;  %v2447_v28 = vld [vmem:[#allocation20_spill] sm:$0xff]  ;;  %v502_v54 = vpop.permute.xlu0 %501  ;;  %v2451_v13 = vld [vmem:[#allocation15_spill] sm:$0xff] }
  0xe5   :  { %2443 = vst [vmem:[#allocation31_spill] sm:$0xff] %v1887_v25  ;;  %v1899_v30 = vadd.f32 %v583_v62, %v567_v48  ;;  %v1901_v31 = vadd.f32 %v582_v3, %v566_v12  ;;  %v1904_v0 = vadd.f32 %v2447_v28, %v648_v51  ;;  %v744_v40 = vsub.f32 %v648_v51, %v2447_v28  ;;  %v2450_v48 = vld [vmem:[#allocation23_spill] sm:$0xff]  ;;  %v587_v28 = vld [vmem:[#allocation4 + $0x128] sm:$0xff] }
  0xe6   :  { %2444 = vst [vmem:[#allocation32_spill] sm:$0xff] %v1894_v21  ;;  %949 = vrot.lane.b32.xlu0 %v1894_v21, %s1175_s2  ;;  %v569_v23 = vmul.f32 0.125, %v553_v49  ;;  %v568_v32 = vmul.f32 0.125, %v552_v5  ;;  %v1910_v15 = vadd.f32 %v878_v9, %v709_v43  ;;  %v853_v62 = vrot.slane %v745_v20, 7  ;;  %v2453_v20 = vld [vmem:[#allocation14_spill] sm:$0xff]  ;;  %v2454_v9 = vld [vmem:[#allocation16_spill] sm:$0xff] }
  0xe7   :  { %2448 = vst [vmem:[#allocation33_spill] sm:$0xff] %v1904_v0  ;;  %v708_v3 = vsub.f32 %v1845_v27, %v2450_v48  ;;  %v907_v12 = vsel %vm784_vm2, %v851_v52, %v877_v8  ;;  %v539_v51 = vsel %vm525_vm1, %v2451_v13, %v504_v38  ;;  %v881_v24 = vrot.slane %v744_v40, 7  ;;  %v2455_v8 = vld [vmem:[#allocation27_spill] sm:$0xff] }
  0xe8   :  { %2449 = vst [vmem:[#allocation13_spill] sm:$0xff] %v1910_v15  ;;  %v651_v26 = vsub.f32 %v569_v23, %v585_v44  ;;  %v650_v25 = vsub.f32 %v568_v32, %v584_v34  ;;  %955 = vrot.lane.b32.xlu1 %v1910_v15, %s1175_s2  ;;  %v1920_v49 = vadd.f32 %v585_v44, %v569_v23  ;;  %v2458_v23 = vld [vmem:[#allocation10_spill] sm:$0xff] }
  0xe9   :  { %v1922_v43 = vadd.f32 %v907_v12, %v708_v3  ;;  %v555_v5 = vadd.f32 %v539_v51, %v2453_v20  ;;  %v538_v52 = vsel %vm525_vm1, %v2454_v9, %v502_v54  ;;  %v2459_v12 = vld [vmem:[#allocation28_spill] sm:$0xff]  ;;  %v880_v51 = vsel %vm784_vm2, %v879_v10, %v1872_v33  ;;  %v508_v20 = vpop.permute.xlu1 %507 }
  0xea   :  { %v1928_v21 = vadd.f32 %v2455_v8, %v651_v26  ;;  %v747_v38 = vsub.f32 %v651_v26, %v2455_v8  ;;  %v1932_v40 = vadd.f32 %v1750_v29, %v650_v25  ;;  %v746_v13 = vsub.f32 %v650_v25, %v1750_v29  ;;  %v506_v26 = vpop.permute.xlu0 %505  ;;  %v586_v29 = vld [vmem:[#allocation4 + $0x120] sm:$0xff] }
  0xeb   :  { %2452 = vst [vmem:[#allocation22_spill] sm:$0xff] %v1922_v43  ;;  %953 = vrot.lane.b32.xlu0 %v1922_v43, %s1175_s2  ;;  %v571_v44 = vmul.f32 0.125, %v555_v5  ;;  %v554_v3 = vadd.f32 %v538_v52, %v2458_v23  ;;  %v711_v54 = vsub.f32 %v1850_v6, %v2459_v12  ;;  %v1943_v15 = vadd.f32 %v584_v34, %v568_v32  ;;  %v2461_v12 = vld [vmem:[#allocation18_spill] sm:$0xff] }
  0xec   :  { %2456 = vst [vmem:[#allocation8_spill] sm:$0xff] %v1928_v21  ;;  %2457 = vst [vmem:[#allocation12_spill] sm:$0xff] %v1932_v40  ;;  %v854_v8 = vrot.slane %v747_v38, 7  ;;  %v710_v25 = vsub.f32 %v1874_v39, %v1752_v58  ;;  %v883_v0 = vrot.slane %v746_v13, 7  ;;  %v908_v60 = vsel %vm784_vm2, %v1872_v33, %v879_v10  ;;  %v2462_v38 = vld [vmem:[#allocation19_spill] sm:$0xff]  ;;  %v588_v40 = vld [vmem:[#allocation4 + $0x150] sm:$0xff] }
  0xed   :  { %v653_v52 = vsub.f32 %v571_v44, %v587_v28  ;;  %v570_v23 = vmul.f32 0.125, %v554_v3  ;;  %v1948_v43 = vadd.f32 %v880_v51, %v711_v54  ;;  %v541_v9 = vsel %vm525_vm1, %v2461_v12, %v508_v20  ;;  %v2463_v33 = vld [vmem:[#allocation11_spill] sm:$0xff]  ;;  %v2464_v12 = vld [vmem:[#allocation9_spill] sm:$0xff] }
  0xee   :  { %v540_v34 = vsel %vm525_vm1, %v2462_v38, %v506_v26  ;;  %v713_v13 = vsub.f32 %v1899_v30, %v1758_v11  ;;  %v1964_v3 = vadd.f32 %v908_v60, %v710_v25  ;;  %v557_v10 = vadd.f32 %v541_v9, %v2463_v33 }
  0xef   :  { %2460 = vst [vmem:[#allocation20_spill] sm:$0xff] %v1948_v43  ;;  %v1957_v32 = vadd.f32 %v1754_v36, %v653_v52  ;;  %v749_v21 = vsub.f32 %v653_v52, %v1754_v36  ;;  %v652_v5 = vsub.f32 %v570_v23, %v586_v29  ;;  %959 = vrot.lane.b32.xlu1 %v1948_v43, %s1175_s2  ;;  %v2465_v36 = vld [vmem:[#allocation17_spill] sm:$0xff]  ;;  %v589_v43 = vld [vmem:[#allocation4 + $0x158] sm:$0xff] }
  0xf0   :  { %v556_v54 = vadd.f32 %v540_v34, %v2464_v12  ;;  %v882_v51 = vsel %vm784_vm2, %v881_v24, %v853_v62  ;;  %v1969_v20 = vadd.f32 %v587_v28, %v571_v44  ;;  %v1971_v26 = vadd.f32 %v586_v29, %v570_v23  ;;  %957 = vrot.lane.b32.xlu0 %v1964_v3, %s1175_s2 }
  0xf1   :  { %v1974_v52 = vadd.f32 %v2465_v36, %v652_v5  ;;  %v748_v38 = vsub.f32 %v652_v5, %v2465_v36  ;;  %v855_v11 = vrot.slane %v749_v21, 7  ;;  %v573_v60 = vmul.f32 0.125, %v557_v10 }
  0xf2   :  { %v572_v9 = vmul.f32 0.125, %v556_v54  ;;  %v1979_v25 = vadd.f32 %v882_v51, %v713_v13  ;;  %v712_v28 = vsub.f32 %v1901_v31, %v1760_v45  ;;  %v909_v44 = vsel %vm784_vm2, %v853_v62, %v881_v24 }
  0xf3   :  { %v885_v34 = vrot.slane %v748_v38, 7  ;;  %v715_v29 = vsub.f32 %v1920_v49, %v1764_v61  ;;  %v1986_v5 = vadd.f32 %v589_v43, %v573_v60  ;;  %v655_v23 = vsub.f32 %v573_v60, %v589_v43 }
  0xf4   :  { %v1988_v21 = vadd.f32 %v588_v40, %v572_v9  ;;  %v654_v33 = vsub.f32 %v572_v9, %v588_v40  ;;  %963 = vrot.lane.b32.xlu1 %v1979_v25, %s1175_s2  ;;  %v1992_v13 = vadd.f32 %v909_v44, %v712_v28  ;;  %v884_v10 = vsel %vm784_vm2, %v883_v0, %v854_v8 }
  0xf5   :  { %v714_v12 = vsub.f32 %v1943_v15, %v1770_v57  ;;  %v910_v24 = vsel %vm784_vm2, %v854_v8, %v883_v0  ;;  %v1999_v62 = vadd.f32 %v1762_v2, %v655_v23  ;;  %v751_v43 = vsub.f32 %v655_v23, %v1762_v2 }
  0xf6   :  { %v2003_v54 = vadd.f32 %v1774_v41, %v654_v33  ;;  %v750_v40 = vsub.f32 %v654_v33, %v1774_v41  ;;  %961 = vrot.lane.b32.xlu0 %v1992_v13, %s1175_s2  ;;  %v2008_v51 = vadd.f32 %v884_v10, %v715_v29  ;;  %v717_v0 = vsub.f32 %v1969_v20, %v1772_v59 }
  0xf7   :  { %v2010_v36 = vadd.f32 %v910_v24, %v714_v12  ;;  %v886_v8 = vsel %vm784_vm2, %v885_v34, %v855_v11  ;;  %v766_v38 = vrot.slane %v1957_v32, 7  ;;  %v797_v2 = vrot.slane %v1974_v52, 7  ;;  %v2500_v52 = vld [vmem:[#allocation29_spill] sm:$0xff] }
  0xf8   :  { %v856_v60 = vrot.slane %v751_v43, 7  ;;  %v887_v9 = vrot.slane %v750_v40, 7  ;;  %967 = vrot.lane.b32.xlu1 %v2008_v51, %s1175_s2  ;;  %v2019_v41 = vadd.f32 %v886_v8, %v717_v0  ;;  %v716_v28 = vsub.f32 %v1971_v26, %v1776_v17 }
  0xf9   :  { %v911_v44 = vsel %vm784_vm2, %v855_v11, %v885_v34  ;;  %v719_v29 = vsub.f32 %v1986_v5, %v1780_v37  ;;  %v718_v33 = vsub.f32 %v1988_v21, %v1782_v55  ;;  %v689_v12 = vadd.f32 %v1721_v53, %v1796_v4 }
  0xfa   :  { %v888_v23 = vsel %vm784_vm2, %v887_v9, %v856_v60  ;;  %v912_v10 = vsel %vm784_vm2, %v856_v60, %v887_v9  ;;  %v767_v24 = vrot.slane %v1999_v62, 7  ;;  %v799_v43 = vrot.slane %v2003_v54, 7  ;;  %965 = vrot.lane.b32.xlu0 %v2010_v36, %s1175_s2 }
  0xfb   :  { %v2036_v11 = vadd.f32 %v911_v44, %v716_v28  ;;  %v2038_v34 = vadd.f32 %v888_v23, %v719_v29  ;;  %v2040_v40 = vadd.f32 %v912_v10, %v718_v33  ;;  %v2466_v0 = vrot.slane %v1785_v47, 7 }
  0xfc   :  { %v2467_v8 = vrot.slane %v1789_v46, 7  ;;  %v688_v54 = vadd.f32 %v1723_v63, %v1798_v1  ;;  %971 = vrot.lane.b32.xlu1 %v2019_v41, %s1175_s2  ;;  %v691_v28 = vadd.f32 %v1729_v50, %v1802_v22  ;;  %v2470_v44 = vrot.slane %v1808_v18, 7 }
  0xfd   :  { %v2469_v4 = vmov %v2466_v0  ;;  %v2471_v29 = vrot.slane %v1812_v7, 7  ;;  %v690_v47 = vadd.f32 %v1731_v35, %v1820_v42  ;;  %v693_v50 = vadd.f32 %v1737_v56, %v1825_v16 }
  0xfe   :  { %v786_v60 = vsel %vm784_vm2, %v2467_v8, %v2466_v0  ;;  %v2468_v53 = vmov %v2467_v8  ;;  %v2473_v1 = vmov %v2470_v44  ;;  %v2474_v22 = vrot.slane %v1832_v14, 7  ;;  %969 = vrot.lane.b32.xlu0 %v2036_v11, %s1175_s2  ;;  %v2478_v8 = vld [vmem:[#allocation28_spill] sm:$0xff] }
  0xff   :  { %v817_v62 = vsel %vm784_vm2, %v2469_v4, %v2468_v53  ;;  %v2056_v9 = vadd.f32 %v786_v60, %v689_v12  ;;  %v788_v46 = vsel %vm784_vm2, %v2471_v29, %v2470_v44  ;;  %v2472_v63 = vmov %v2471_v29  ;;  %v2479_v53 = vld [vmem:[#allocation30_spill] sm:$0xff]  ;;  %v2485_v44 = vld [vmem:[#allocation21_spill] sm:$0xff] }
 0x100   :  { %v2067_v23 = vadd.f32 %v817_v62, %v688_v54  ;;  %v818_v33 = vsel %vm784_vm2, %v2473_v1, %v2472_v63  ;;  %v2475_v10 = vrot.slane %v1836_v19, 7  ;;  %v2083_v35 = vadd.f32 %v788_v46, %v691_v28  ;;  %v2481_v62 = vld [vmem:[#allocation26_spill] sm:$0xff]  ;;  %975 = vrot.lane.b32.xlu1 %v2038_v34, %s1175_s2  ;;  %v2486_v46 = vld [vmem:[#allocation31_spill] sm:$0xff]  ;;  %v2488_v63 = vld [vmem:[#allocation33_spill] sm:$0xff] }
 0x101   :  { %v2085_v42 = vadd.f32 %v818_v33, %v690_v47  ;;  %v692_v18 = vadd.f32 %v2450_v48, %v1845_v27  ;;  %v2477_v56 = vmov %v2474_v22  ;;  %v695_v60 = vadd.f32 %v2478_v8, %v1850_v6 }
 0x102   :  { %v790_v12 = vsel %vm784_vm2, %v2475_v10, %v2474_v22  ;;  %v2476_v7 = vmov %v2475_v10  ;;  %v2480_v4 = vrot.slane %v2479_v53, 7  ;;  %v2482_v54 = vrot.slane %v2481_v62, 7  ;;  %973 = vrot.lane.b32.xlu0 %v2040_v40, %s1175_s2 }
 0x103   :  { %v819_v16 = vsel %vm784_vm2, %v2477_v56, %v2476_v7  ;;  %v2094_v0 = vadd.f32 %v790_v12, %v693_v50  ;;  %v694_v27 = vadd.f32 %v1752_v58, %v1874_v39  ;;  %v697_v29 = vadd.f32 %v2485_v44, %v1899_v30  ;;  %v2492_v7 = vld [vmem:[#allocation8_spill] sm:$0xff] }
 0x104   :  { %v792_v28 = vsel %vm784_vm2, %v2482_v54, %v2480_v4  ;;  %v2107_v14 = vadd.f32 %v819_v16, %v692_v18  ;;  %v2483_v19 = vmov %v2482_v54  ;;  %v2484_v48 = vmov %v2480_v4  ;;  %v2494_v16 = vld [vmem:[#allocation12_spill] sm:$0xff] }
 0x105   :  { %v820_v6 = vsel %vm784_vm2, %v2484_v48, %v2483_v19  ;;  %v2487_v47 = vrot.slane %v2486_v46, 7  ;;  %v2489_v1 = vrot.slane %v2488_v63, 7  ;;  %v2121_v39 = vadd.f32 %v792_v28, %v695_v60  ;;  %v2498_v54 = vld [vmem:[#allocation24_spill] sm:$0xff] }
 0x106   :  { %v2123_v33 = vadd.f32 %v820_v6, %v694_v27  ;;  %v696_v50 = vadd.f32 %v1760_v45, %v1901_v31  ;;  %v699_v18 = vadd.f32 %v1764_v61, %v1920_v49  ;;  %v2493_v56 = vrot.slane %v2492_v7, 7  ;;  %995 = vrot.lane.b32.xlu1 %v2498_v54, %s1176_s14  ;;  %v2499_v6 = vld [vmem:[#allocation25_spill] sm:$0xff] }
 0x107   :  { %v794_v58 = vsel %vm784_vm2, %v2489_v1, %v2487_v47  ;;  %v2490_v22 = vmov %v2489_v1  ;;  %v2491_v10 = vmov %v2487_v47  ;;  %v2495_v8 = vrot.slane %v2494_v16, 7  ;;  %993 = vrot.lane.b32.xlu0 %v2499_v6, %s1176_s14 }
 0x108   :  { %v821_v12 = vsel %vm784_vm2, %v2491_v10, %v2490_v22  ;;  %v2134_v30 = vadd.f32 %v794_v58, %v697_v29  ;;  %v698_v31 = vadd.f32 %v1770_v57, %v1943_v15  ;;  %v2497_v4 = vmov %v2493_v56 }
 0x109   :  { %v796_v45 = vsel %vm784_vm2, %v2495_v8, %v2493_v56  ;;  %v2145_v60 = vadd.f32 %v821_v12, %v696_v50  ;;  %v2496_v53 = vmov %v2495_v8  ;;  %v701_v61 = vadd.f32 %v1772_v59, %v1969_v20 }
 0x10a   :  { %v822_v62 = vsel %vm784_vm2, %v2497_v4, %v2496_v53  ;;  %v798_v49 = vsel %vm784_vm2, %v797_v2, %v766_v38  ;;  %v2160_v57 = vadd.f32 %v796_v45, %v699_v18  ;;  %v700_v28 = vadd.f32 %v1776_v17, %v1971_v26  ;;  %999 = vrot.lane.b32.xlu1 %v2500_v52, %s1176_s14 }
 0x10b   :  { %v2162_v15 = vadd.f32 %v822_v62, %v698_v31  ;;  %v823_v59 = vsel %vm784_vm2, %v766_v38, %v797_v2  ;;  %v2171_v20 = vadd.f32 %v798_v49, %v701_v61  ;;  %v703_v27 = vadd.f32 %v1780_v37, %v1986_v5  ;;  %v2501_v38 = vld [vmem:[#allocation32_spill] sm:$0xff]  ;;  %v2502_v37 = vld [vmem:[#allocation13_spill] sm:$0xff]  ;;  %v2503_v5 = vld [vmem:[#allocation22_spill] sm:$0xff] }
 0x10c   :  { %v800_v19 = vsel %vm784_vm2, %v799_v43, %v767_v24  ;;  %v702_v48 = vadd.f32 %v1782_v55, %v1988_v21  ;;  %v2179_v44 = vadd.f32 %v823_v59, %v700_v28  ;;  %v824_v17 = vsel %vm784_vm2, %v767_v24, %v799_v43  ;;  %997 = vrot.lane.b32.xlu0 %v2501_v38, %s1176_s14  ;;  %v2504_v2 = vld [vmem:[#allocation20_spill] sm:$0xff] }
 0x10d   :  { %v2182_v26 = vadd.f32 %v800_v19, %v703_v27 }
 0x10e   :  { %v2184_v32 = vadd.f32 %v824_v17, %v702_v48  ;;  %1003 = vrot.lane.b32.xlu1 %v2502_v37, %s1176_s14 }
 0x110   :  { %1001 = vrot.lane.b32.xlu0 %v2503_v5, %s1176_s14 }
 0x112   :  { %1007 = vrot.lane.b32.xlu1 %v2504_v2, %s1176_s14 }
 0x114   :  { %1005 = vrot.lane.b32.xlu0 %v1964_v3, %s1176_s14 }
 0x116   :  { %1011 = vrot.lane.b32.xlu1 %v1979_v25, %s1176_s14 }
 0x118   :  { %1009 = vrot.lane.b32.xlu0 %v1992_v13, %s1176_s14 }
 0x11a   :  { %1015 = vrot.lane.b32.xlu1 %v2008_v51, %s1176_s14 }
 0x11c   :  { %1013 = vrot.lane.b32.xlu0 %v2010_v36, %s1176_s14 }
 0x11e   :  { %1019 = vrot.lane.b32.xlu1 %v2019_v41, %s1176_s14 }
 0x120   :  { %1017 = vrot.lane.b32.xlu0 %v2036_v11, %s1176_s14 }
 0x122   :  { %1023 = vrot.lane.b32.xlu1 %v2038_v34, %s1176_s14 }
 0x124   :  { %1021 = vrot.lane.b32.xlu0 %v2040_v40, %s1176_s14 }
 0x14d   :  { %v948_v55 = vpop.permute.xlu1 %947 }
 0x152   :  { %v946_v21 = vpop.permute.xlu0 %945 }
 0x155   :  { %v952_v24 = vpop.permute.xlu1 %951 }
 0x158   :  { %v950_v3 = vpop.permute.xlu0 %949 }
 0x15a   :  { %v956_v43 = vpop.permute.xlu1 %955 }
 0x15d   :  { %v954_v25 = vpop.permute.xlu0 %953 }
 0x161   :  { %v960_v29 = vpop.permute.xlu1 %959 }
 0x162   :  { %v958_v13 = vpop.permute.xlu0 %957 }
 0x166   :  { %v964_v46 = vpop.permute.xlu1 %963 }
 0x168   :  { %v962_v51 = vpop.permute.xlu0 %961 }
 0x16a   :  { %v968_v47 = vpop.permute.xlu1 %967 }
 0x16c   :  { %v966_v36 = vpop.permute.xlu0 %965 }
 0x16e   :  { %v2200_v63 = vpop.permute.xlu1 %971 }
 0x170   :  { %v2202_v41 = vpop.permute.xlu0 %969 }
 0x172   :  { %v2204_v11 = vpop.permute.xlu1 %975 }
 0x174   :  { %v2206_v34 = vpop.permute.xlu0 %973 }
 0x178   :  { %v996_v40 = vpop.permute.xlu1 %995 }
 0x179   :  { %v1043_v1 = vsel %vm1041_vm3, %v948_v55, %v996_v40  ;;  %v994_v50 = vpop.permute.xlu0 %993 }
 0x17a   :  { %v1059_v58 = vadd.f32 %v1043_v1, %v2056_v9  ;;  %v1042_v22 = vsel %vm1041_vm3, %v946_v21, %v994_v50 }
 0x17b   :  { %v1058_v12 = vadd.f32 %v1042_v22, %v2067_v23 }
 0x17c   :  { %v1075_v10 = vmul.f32 0.125, %v1059_v58  ;;  %v1000_v18 = vpop.permute.xlu1 %999 }
 0x17d   :  { %v1045_v7 = vsel %vm1041_vm3, %v952_v24, %v1000_v18  ;;  %v1074_v56 = vmul.f32 0.125, %v1058_v12 }
 0x17e   :  { %1092 = vst.msk [vmem:[%s2311_s3 + $0x8] sm:$0xff] %vm1090_vm4, %v1075_v10  ;;  %v1061_v16 = vadd.f32 %v1045_v7, %v2083_v35  ;;  %v998_v8 = vpop.permute.xlu0 %997 }
 0x17f   :  { %v1044_v9 = vsel %vm1041_vm3, %v950_v3, %v998_v8  ;;  %1091 = vst.msk [vmem:[%s2311_s3] sm:$0xff] %vm1090_vm4, %v1074_v56 }
 0x180   :  { %v1077_v23 = vmul.f32 0.125, %v1061_v16  ;;  %v1060_v45 = vadd.f32 %v1044_v9, %v2085_v42  ;;  %v1004_v31 = vpop.permute.xlu1 %1003 }
 0x181   :  { %v1047_v53 = vsel %vm1041_vm3, %v956_v43, %v1004_v31 }
 0x182   :  { %1094 = vst.msk [vmem:[%s2311_s3 + $0x18] sm:$0xff] %vm1090_vm4, %v1077_v23  ;;  %v1076_v35 = vmul.f32 0.125, %v1060_v45  ;;  %v1063_v4 = vadd.f32 %v1047_v53, %v2094_v0  ;;  %v1002_v62 = vpop.permute.xlu0 %1001 }
 0x183   :  { %v1046_v61 = vsel %vm1041_vm3, %v954_v25, %v1002_v62 }
 0x184   :  { %1093 = vst.msk [vmem:[%s2311_s3 + $0x10] sm:$0xff] %vm1090_vm4, %v1076_v35  ;;  %v1079_v42 = vmul.f32 0.125, %v1063_v4  ;;  %v1062_v49 = vadd.f32 %v1046_v61, %v2107_v14  ;;  %v1008_v54 = vpop.permute.xlu1 %1007 }
 0x185   :  { %v1049_v28 = vsel %vm1041_vm3, %v960_v29, %v1008_v54 }
 0x186   :  { %1096 = vst.msk [vmem:[%s2311_s3 + $0x28] sm:$0xff] %vm1090_vm4, %v1079_v42  ;;  %v1078_v0 = vmul.f32 0.125, %v1062_v49  ;;  %v1065_v59 = vadd.f32 %v1049_v28, %v2121_v39  ;;  %v1006_v27 = vpop.permute.xlu0 %1005 }
 0x187   :  { %v1048_v19 = vsel %vm1041_vm3, %v958_v13, %v1006_v27 }
 0x188   :  { %1095 = vst.msk [vmem:[%s2311_s3 + $0x20] sm:$0xff] %vm1090_vm4, %v1078_v0  ;;  %v1081_v14 = vmul.f32 0.125, %v1065_v59  ;;  %v1064_v48 = vadd.f32 %v1048_v19, %v2123_v33  ;;  %v1012_v6 = vpop.permute.xlu1 %1011 }
 0x189   :  { %v1051_v17 = vsel %vm1041_vm3, %v964_v46, %v1012_v6 }
 0x18a   :  { %1098 = vst.msk [vmem:[%s2311_s3 + $0x38] sm:$0xff] %vm1090_vm4, %v1081_v14  ;;  %v1080_v39 = vmul.f32 0.125, %v1064_v48  ;;  %v1067_v52 = vadd.f32 %v1051_v17, %v2134_v30  ;;  %v1010_v38 = vpop.permute.xlu0 %1009 }
 0x18b   :  { %v1050_v37 = vsel %vm1041_vm3, %v962_v51, %v1010_v38 }
 0x18c   :  { %1097 = vst.msk [vmem:[%s2311_s3 + $0x30] sm:$0xff] %vm1090_vm4, %v1080_v39  ;;  %v1083_v33 = vmul.f32 0.125, %v1067_v52  ;;  %v1066_v5 = vadd.f32 %v1050_v37, %v2145_v60  ;;  %v1016_v2 = vpop.permute.xlu1 %1015 }
 0x18d   :  { %v1053_v55 = vsel %vm1041_vm3, %v968_v47, %v1016_v2 }
 0x18e   :  { %1100 = vst.msk [vmem:[%s2311_s3 + $0x48] sm:$0xff] %vm1090_vm4, %v1083_v33  ;;  %v1082_v30 = vmul.f32 0.125, %v1066_v5  ;;  %v1069_v21 = vadd.f32 %v1053_v55, %v2160_v57  ;;  %v1014_v24 = vpop.permute.xlu0 %1013 }
 0x18f   :  { %v1052_v3 = vsel %vm1041_vm3, %v966_v36, %v1014_v24 }
 0x190   :  { %1099 = vst.msk [vmem:[%s2311_s3 + $0x40] sm:$0xff] %vm1090_vm4, %v1082_v30  ;;  %v1085_v60 = vmul.f32 0.125, %v1069_v21  ;;  %v1068_v43 = vadd.f32 %v1052_v3, %v2162_v15  ;;  %v1020_v25 = vpop.permute.xlu1 %1019 }
 0x191   :  { %v1055_v29 = vsel %vm1041_vm3, %v2200_v63, %v1020_v25 }
 0x192   :  { %1102 = vst.msk [vmem:[%s2311_s3 + $0x58] sm:$0xff] %vm1090_vm4, %v1085_v60  ;;  %v1084_v57 = vmul.f32 0.125, %v1068_v43  ;;  %v1071_v13 = vadd.f32 %v1055_v29, %v2171_v20  ;;  %v1018_v46 = vpop.permute.xlu0 %1017 }
 0x193   :  { %v1054_v51 = vsel %vm1041_vm3, %v2202_v41, %v1018_v46 }
 0x194   :  { %1101 = vst.msk [vmem:[%s2311_s3 + $0x50] sm:$0xff] %vm1090_vm4, %v1084_v57  ;;  %v1087_v15 = vmul.f32 0.125, %v1071_v13  ;;  %v1070_v47 = vadd.f32 %v1054_v51, %v2179_v44  ;;  %v1024_v36 = vpop.permute.xlu1 %1023 }
 0x195   :  { %v1057_v63 = vsel %vm1041_vm3, %v2204_v11, %v1024_v36 }
 0x196   :  { %1104 = vst.msk [vmem:[%s2311_s3 + $0x68] sm:$0xff] %vm1090_vm4, %v1087_v15  ;;  %v1086_v20 = vmul.f32 0.125, %v1070_v47  ;;  %v1073_v41 = vadd.f32 %v1057_v63, %v2182_v26  ;;  %v1022_v40 = vpop.permute.xlu0 %1021 }
 0x197   :  { %v1056_v1 = vsel %vm1041_vm3, %v2206_v34, %v1022_v40 }
 0x198   :  { %1103 = vst.msk [vmem:[%s2311_s3 + $0x60] sm:$0xff] %vm1090_vm4, %v1086_v20  ;;  %v1089_v44 = vmul.f32 0.125, %v1073_v41  ;;  %v1072_v11 = vadd.f32 %v1056_v1, %v2184_v32 }
 0x19a   :  { %1106 = vst.msk [vmem:[%s2311_s3 + $0x78] sm:$0xff] %vm1090_vm4, %v1089_v44  ;;  %v1088_v58 = vmul.f32 0.125, %v1072_v11 }
 0x19c   :  { %1105 = vst.msk [vmem:[%s2311_s3 + $0x70] sm:$0xff] %vm1090_vm4, %v1088_v58 }
 0x19d   :  { %1111 = vsyncpa [#allocation3], 1 }
 0x19e   :  { %1112 = vsyncpa [#allocation5], 1 }

</bundles_post_ra>
